<compile_context>
chip_gen: v6e
topology: v6e:2x2x1
jax: 0.10.0
libtpu: 0.0.40
codegen_flags: <defaults>
</compile_context>

<pallas_src>
import functools

import jax
import jax.numpy as jnp
from jax.experimental import pallas as pl
from jax.experimental.pallas import tpu as pltpu


def _round_up(x, m):
    return (x + m - 1) // m * m


# --------------------------------------------------------------------------
# Pallas kernels
# --------------------------------------------------------------------------

def _se_pool_kernel(x_ref, pooled_ref, *, inv_hw):
    # x_ref: (1, TC, H, W) -> per-channel mean over (H, W): (1, TC, 1, 1).
    # Two single-axis reductions: lane (W) reduce, then sublane (H) reduce.
    s = jnp.sum(x_ref[...], axis=3, keepdims=True)       # (1, TC, H, 1)
    pooled_ref[...] = jnp.sum(s, axis=2, keepdims=True) * inv_hw


def _se_gate_kernel(p_ref, w1_ref, b1_ref, w2_ref, b2_ref, gate_ref):
    # p_ref: (B, C); w1_ref: (C, mid); w2_ref: (mid, C); gate_ref: (B, C)
    h = jnp.dot(p_ref[...], w1_ref[...],
                preferred_element_type=jnp.float32) + b1_ref[...]
    h = jnp.clip(h, 0.0, 6.0)                             # ReLU6
    g = jnp.dot(h, w2_ref[...],
                preferred_element_type=jnp.float32) + b2_ref[...]
    gate_ref[...] = jnp.clip(g, 0.0, 6.0)                 # ReLU6 (per spec)


def _se_scale_kernel(x_ref, gate_ref, o_ref):
    # x_ref: (1, TC, H, W); gate_ref: (1, TC, 1, 1) broadcast over (H, W).
    o_ref[...] = x_ref[...] * gate_ref[...]


# --------------------------------------------------------------------------
# Wrapper
# --------------------------------------------------------------------------

_TARGET_BLOCK_BYTES = 1 * 1024 * 1024   # per-buffer x-tile budget (f32, layout-padded)


def _pick_channel_tile(C, H, W):
    """Channel tile: multiple of 8 that divides C (or full C), VMEM-capped."""
    # Per-channel VMEM slab after (8, 128) layout padding of the (H, W) tile.
    slab = _round_up(max(H, 1), 8) * _round_up(max(W, 1), 128) * 4
    cap = max(1, _TARGET_BLOCK_BYTES // slab)
    if C <= cap:
        return C                # whole channel dim per block
    if C % 8 != 0:
        return C                # full-dim block keeps the (8,128) rule trivially
    tc = 8
    for cand in range(8, min(C, cap) + 1, 8):
        if C % cand == 0:
            tc = cand
    return tc


def squeeze_and_excite(x, w1, b1, w2, b2):
    """Pallas SqueezeAndExcite forward.

    x  : (B, C, H, W) float32 (NCHW, as in the PyTorch module)
    w1 : (mid, C), b1 : (mid,)   -- first Linear (PyTorch convention)
    w2 : (C, mid), b2 : (C,)     -- second Linear (out_channel == in_channel)
    returns (B, C, H, W) float32
    """
    B, C, H, W = x.shape
    mid = w1.shape[0]
    assert w1.shape == (mid, C) and b1.shape == (mid,)
    assert w2.shape == (C, mid) and b2.shape == (C,), \
        "out_channel must equal in_channel (gate is view(b, c, 1, 1))"

    x = x.astype(jnp.float32)
    TC = _pick_channel_tile(C, H, W)
    n_c = pl.cdiv(C, TC)

    # ---- Pass 1: squeeze (global average pool) -> (B, C, 1, 1) ----
    pooled = pl.pallas_call(
        functools.partial(_se_pool_kernel, inv_hw=1.0 / float(H * W)),
        out_shape=jax.ShapeDtypeStruct((B, C, 1, 1), jnp.float32),
        grid=(B, n_c),
        in_specs=[pl.BlockSpec((1, TC, H, W), lambda b, c: (b, c, 0, 0))],
        out_specs=pl.BlockSpec((1, TC, 1, 1), lambda b, c: (b, c, 0, 0)),
        compiler_params=pltpu.CompilerParams(
            dimension_semantics=("parallel", "parallel")),
    )(x)

    # ---- Excite: two tiny FCs + ReLU6 on the (B, C) pooled vector ----
    # (whole arrays resident in VMEM; negligible traffic next to the x passes)
    w1t = jnp.transpose(w1).astype(jnp.float32)           # (C, mid)
    w2t = jnp.transpose(w2).astype(jnp.float32)           # (mid, C)
    b1r = b1.astype(jnp.float32).reshape(1, mid)
    b2r = b2.astype(jnp.float32).reshape(1, C)
    gate = pl.pallas_call(
        _se_gate_kernel,
        out_shape=jax.ShapeDtypeStruct((B, C), jnp.float32),
    )(pooled.reshape(B, C), w1t, b1r, w2t, b2r)

    # ---- Pass 2: scale, y = gate * x (broadcast over H, W) ----
    y = pl.pallas_call(
        _se_scale_kernel,
        out_shape=jax.ShapeDtypeStruct((B, C, H, W), jnp.float32),
        grid=(B, n_c),
        in_specs=[
            pl.BlockSpec((1, TC, H, W), lambda b, c: (b, c, 0, 0)),
            pl.BlockSpec((1, TC, 1, 1), lambda b, c: (b, c, 0, 0)),
        ],
        out_specs=pl.BlockSpec((1, TC, H, W), lambda b, c: (b, c, 0, 0)),
        compiler_params=pltpu.CompilerParams(
            dimension_semantics=("parallel", "parallel")),
    )(x, gate.reshape(B, C, 1, 1))

    return y


# --------------------------------------------------------------------------
# Pure-JAX reference (mirrors the PyTorch module exactly)
# --------------------------------------------------------------------------

def se_reference(x, w1, b1, w2, b2):
    pooled = jnp.mean(x, axis=(2, 3))                      # (B, C)
    h = jnp.clip(pooled @ w1.T + b1, 0.0, 6.0)
    g = jnp.clip(h @ w2.T + b2, 0.0, 6.0)
    return g[:, :, None, None] * x


# --------------------------------------------------------------------------
# Demo / self-test
# --------------------------------------------------------------------------

if __name__ == "__main__":
    fwd = jax.jit(squeeze_and_excite)
    key = jax.random.PRNGKey(0)

    configs = [
        (2, 64, 16, 16, 4),    # lane-aligned-ish channels, 16x16 spatial
        (3, 48, 14, 14, 4),    # unaligned spatial dims, mid = 12
    ]
    for (B, C, H, W, divide) in configs:
        mid = C // divide
        key, k1, k2, k3, k4, k5 = jax.random.split(key, 6)
        x = jax.random.normal(k1, (B, C, H, W), jnp.float32)
        w1 = jax.random.normal(k2, (mid, C), jnp.float32) * (1.0 / C) ** 0.5
        b1 = jax.random.normal(k3, (mid,), jnp.float32) * 0.05
        w2 = jax.random.normal(k4, (C, mid), jnp.float32) * (1.0 / mid) ** 0.5
        b2 = jax.random.normal(k5, (C,), jnp.float32) * 0.05

        y = jax.block_until_ready(fwd(x, w1, b1, w2, b2))
        assert y.shape == (B, C, H, W)
        assert bool(jnp.all(jnp.isfinite(y)))
        y_ref = se_reference(x, w1, b1, w2, b2)
        assert bool(jnp.allclose(y, y_ref, atol=1e-4, rtol=1e-4)), \
            float(jnp.max(jnp.abs(y - y_ref)))

    print("KERNEL_OK")
</pallas_src>

<mosaic_0001>
module attributes {stable_mosaic.version = 11 : i64} {
  func.func @_se_pool_kernel(%arg0: i32, %arg1: i32, %arg2: memref<1x64x16x16xf32, #tpu.memory_space<vmem>>, %arg3: memref<1x64x1x1xf32, #tpu.memory_space<vmem>>) attributes {dimension_semantics = [#tpu.dimension_semantics<parallel>, #tpu.dimension_semantics<parallel>], iteration_bounds = array<i64: 2, 1>, scalar_prefetch = 0 : i64, scratch_operands = 0 : i64, tpu.core_type = #tpu.core_type<tc>, window_params = [{transform_indices = @transform_0, window_bounds = array<i64: 1, 64, 16, 16>}, {transform_indices = @transform_1, window_bounds = array<i64: 1, 64, 1, 1>}]} {
    %c0 = arith.constant 0 : index
    %c0_0 = arith.constant 0 : index
    %c0_1 = arith.constant 0 : index
    %c0_2 = arith.constant 0 : index
    %0 = vector.load %arg2[%c0, %c0_0, %c0_1, %c0_2] : memref<1x64x16x16xf32, #tpu.memory_space<vmem>>, vector<1x64x16x16xf32>
    %cst = arith.constant dense<0.000000e+00> : vector<1x64x16xf32>
    %1 = vector.multi_reduction <add>, %0, %cst [3] : vector<1x64x16x16xf32> to vector<1x64x16xf32>
    %2 = vector.shape_cast %1 : vector<1x64x16xf32> to vector<1x64x16x1xf32>
    %cst_3 = arith.constant dense<0.000000e+00> : vector<1x64x1xf32>
    %3 = vector.multi_reduction <add>, %2, %cst_3 [2] : vector<1x64x16x1xf32> to vector<1x64x1xf32>
    %4 = vector.shape_cast %3 : vector<1x64x1xf32> to vector<1x64x1x1xf32>
    %cst_4 = arith.constant 3.906250e-03 : f32
    %5 = vector.broadcast %cst_4 : f32 to vector<1x64x1x1xf32>
    %6 = arith.mulf %4, %5 : vector<1x64x1x1xf32>
    %c0_5 = arith.constant 0 : index
    %c0_6 = arith.constant 0 : index
    %c0_7 = arith.constant 0 : index
    %c0_8 = arith.constant 0 : index
    %7 = vector.load %arg3[%c0_5, %c0_6, %c0_7, %c0_8] : memref<1x64x1x1xf32, #tpu.memory_space<vmem>>, vector<1x64x1x1xf32>
    tpu.vector_store %arg3[%c0_5, %c0_6, %c0_7, %c0_8], %6 {strides = array<i32>} : memref<1x64x1x1xf32, #tpu.memory_space<vmem>>, vector<1x64x1x1xf32>,
    return
  }
  func.func @transform_0(%arg0: i32, %arg1: i32) -> (i32, i32, i32, i32) {
    %c0_i32 = arith.constant 0 : i32
    %c0_i32_0 = arith.constant 0 : i32
    %c0_i32_1 = arith.constant 0 : i32
    return %arg0, %arg1, %c0_i32, %c0_i32_0 : i32, i32, i32, i32
  }
  func.func @transform_1(%arg0: i32, %arg1: i32) -> (i32, i32, i32, i32) {
    %c0_i32 = arith.constant 0 : i32
    %c0_i32_0 = arith.constant 0 : i32
    %c0_i32_1 = arith.constant 0 : i32
    return %arg0, %arg1, %c0_i32, %c0_i32_0 : i32, i32, i32, i32
  }
}

module attributes {stable_mosaic.version = 11 : i64} {
  func.func @_se_scale_kernel(%arg0: i32, %arg1: i32, %arg2: memref<1x64x16x16xf32, #tpu.memory_space<vmem>>, %arg3: memref<1x64x1x1xf32, #tpu.memory_space<vmem>>, %arg4: memref<1x64x16x16xf32, #tpu.memory_space<vmem>>) attributes {dimension_semantics = [#tpu.dimension_semantics<parallel>, #tpu.dimension_semantics<parallel>], iteration_bounds = array<i64: 2, 1>, scalar_prefetch = 0 : i64, scratch_operands = 0 : i64, tpu.core_type = #tpu.core_type<tc>, window_params = [{transform_indices = @transform_0, window_bounds = array<i64: 1, 64, 16, 16>}, {transform_indices = @transform_1, window_bounds = array<i64: 1, 64, 1, 1>}, {transform_indices = @transform_2, window_bounds = array<i64: 1, 64, 16, 16>}]} {
    %c0 = arith.constant 0 : index
    %c0_0 = arith.constant 0 : index
    %c0_1 = arith.constant 0 : index
    %c0_2 = arith.constant 0 : index
    %0 = vector.load %arg2[%c0, %c0_0, %c0_1, %c0_2] : memref<1x64x16x16xf32, #tpu.memory_space<vmem>>, vector<1x64x16x16xf32>
    %c0_3 = arith.constant 0 : index
    %c0_4 = arith.constant 0 : index
    %c0_5 = arith.constant 0 : index
    %c0_6 = arith.constant 0 : index
    %1 = vector.load %arg3[%c0_3, %c0_4, %c0_5, %c0_6] : memref<1x64x1x1xf32, #tpu.memory_space<vmem>>, vector<1x64x1x1xf32>
    %2 = vector.broadcast %1 : vector<1x64x1x1xf32> to vector<1x64x16x16xf32>
    %3 = arith.mulf %0, %2 : vector<1x64x16x16xf32>
    %c0_7 = arith.constant 0 : index
    %c0_8 = arith.constant 0 : index
    %c0_9 = arith.constant 0 : index
    %c0_10 = arith.constant 0 : index
    %4 = vector.load %arg4[%c0_7, %c0_8, %c0_9, %c0_10] : memref<1x64x16x16xf32, #tpu.memory_space<vmem>>, vector<1x64x16x16xf32>
    tpu.vector_store %arg4[%c0_7, %c0_8, %c0_9, %c0_10], %3 {strides = array<i32>} : memref<1x64x16x16xf32, #tpu.memory_space<vmem>>, vector<1x64x16x16xf32>,
    return
  }
  func.func @transform_0(%arg0: i32, %arg1: i32) -> (i32, i32, i32, i32) {
    %c0_i32 = arith.constant 0 : i32
    %c0_i32_0 = arith.constant 0 : i32
    %c0_i32_1 = arith.constant 0 : i32
    return %arg0, %arg1, %c0_i32, %c0_i32_0 : i32, i32, i32, i32
  }
  func.func @transform_1(%arg0: i32, %arg1: i32) -> (i32, i32, i32, i32) {
    %c0_i32 = arith.constant 0 : i32
    %c0_i32_0 = arith.constant 0 : i32
    %c0_i32_1 = arith.constant 0 : i32
    return %arg0, %arg1, %c0_i32, %c0_i32_0 : i32, i32, i32, i32
  }
  func.func @transform_2(%arg0: i32, %arg1: i32) -> (i32, i32, i32, i32) {
    %c0_i32 = arith.constant 0 : i32
    %c0_i32_0 = arith.constant 0 : i32
    %c0_i32_1 = arith.constant 0 : i32
    return %arg0, %arg1, %c0_i32, %c0_i32_0 : i32, i32, i32, i32
  }
}

module attributes {stable_mosaic.version = 11 : i64} {
  func.func @_se_gate_kernel(%arg0: memref<2x64xf32, #tpu.memory_space<vmem>>, %arg1: memref<64x16xf32, #tpu.memory_space<vmem>>, %arg2: memref<1x16xf32, #tpu.memory_space<vmem>>, %arg3: memref<16x64xf32, #tpu.memory_space<vmem>>, %arg4: memref<1x64xf32, #tpu.memory_space<vmem>>, %arg5: memref<2x64xf32, #tpu.memory_space<vmem>>) attributes {dimension_semantics = [], scalar_prefetch = 0 : i64, scratch_operands = 0 : i64, tpu.core_type = #tpu.core_type<tc>} {
    %c0 = arith.constant 0 : index
    %c0_0 = arith.constant 0 : index
    %0 = vector.load %arg0[%c0, %c0_0] : memref<2x64xf32, #tpu.memory_space<vmem>>, vector<2x64xf32>
    %c0_1 = arith.constant 0 : index
    %c0_2 = arith.constant 0 : index
    %1 = vector.load %arg1[%c0_1, %c0_2] : memref<64x16xf32, #tpu.memory_space<vmem>>, vector<64x16xf32>
    %cst = arith.constant dense<0.000000e+00> : vector<2x16xf32>
    %2 = tpu.matmul %0, %1, %cst {dimension_numbers = #tpu.dot_dimension_numbers<[1], [0], [0], [1], [0, 0, 1, 1], [], []>} : vector<2x64xf32>, vector<64x16xf32>, vector<2x16xf32> -> vector<2x16xf32>
    %c0_3 = arith.constant 0 : index
    %c0_4 = arith.constant 0 : index
    %3 = vector.load %arg2[%c0_3, %c0_4] : memref<1x16xf32, #tpu.memory_space<vmem>>, vector<1x16xf32>
    %4 = vector.broadcast %3 : vector<1x16xf32> to vector<2x16xf32>
    %5 = arith.addf %2, %4 : vector<2x16xf32>
    %cst_5 = arith.constant 0.000000e+00 : f32
    %cst_6 = arith.constant 6.000000e+00 : f32
    %6 = vector.broadcast %cst_5 : f32 to vector<2x16xf32>
    %7 = arith.maximumf %6, %5 : vector<2x16xf32>
    %8 = vector.broadcast %cst_6 : f32 to vector<2x16xf32>
    %9 = arith.minimumf %8, %7 : vector<2x16xf32>
    %c0_7 = arith.constant 0 : index
    %c0_8 = arith.constant 0 : index
    %10 = vector.load %arg3[%c0_7, %c0_8] : memref<16x64xf32, #tpu.memory_space<vmem>>, vector<16x64xf32>
    %cst_9 = arith.constant dense<0.000000e+00> : vector<2x64xf32>
    %11 = tpu.matmul %9, %10, %cst_9 {dimension_numbers = #tpu.dot_dimension_numbers<[1], [0], [0], [1], [0, 0, 1, 1], [], []>} : vector<2x16xf32>, vector<16x64xf32>, vector<2x64xf32> -> vector<2x64xf32>
    %c0_10 = arith.constant 0 : index
    %c0_11 = arith.constant 0 : index
    %12 = vector.load %arg4[%c0_10, %c0_11] : memref<1x64xf32, #tpu.memory_space<vmem>>, vector<1x64xf32>
    %13 = vector.broadcast %12 : vector<1x64xf32> to vector<2x64xf32>
    %14 = arith.addf %11, %13 : vector<2x64xf32>
    %cst_12 = arith.constant 0.000000e+00 : f32
    %cst_13 = arith.constant 6.000000e+00 : f32
    %15 = vector.broadcast %cst_12 : f32 to vector<2x64xf32>
    %16 = arith.maximumf %15, %14 : vector<2x64xf32>
    %17 = vector.broadcast %cst_13 : f32 to vector<2x64xf32>
    %18 = arith.minimumf %17, %16 : vector<2x64xf32>
    %c0_14 = arith.constant 0 : index
    %c0_15 = arith.constant 0 : index
    %19 = vector.load %arg5[%c0_14, %c0_15] : memref<2x64xf32, #tpu.memory_space<vmem>>, vector<2x64xf32>
    tpu.vector_store %arg5[%c0_14, %c0_15], %18 {strides = array<i32>} : memref<2x64xf32, #tpu.memory_space<vmem>>, vector<2x64xf32>,
    return
  }
}

</mosaic_0001>

<bundles_post_ra>
// kernel: squeeze_and_excite.4
= control target key start
LH: loop header
LB: loop body
LE: loop exit
PB: predicated region body
PF: predicated region fallthrough
CT: control target
= control target key end

     0   :  { %v247_v0 = vmov 0.0   ;;  %vm248_vm0 = vmmov 0   ;;  %vm36_vm1 = vcmask 523264   ;;  %vm121_vm2 = vcmask 130048   ;;  %s321_s1 = inlined_call_operand.vmem [shape: f32[64,16], index: 1, kind: input, shape index: {}]   ;;  %s322_s0 = inlined_call_operand.vmem [shape: f32[2,64], index: 0, kind: input, shape index: {}]   ;;  %s323_s3 = inlined_call_operand.vmem [shape: f32[16,64], index: 3, kind: input, shape index: {}]   ;;  %s324_s2 = inlined_call_operand.vmem [shape: f32[1,16], index: 2, kind: input, shape index: {}]   ;;  %s325_s4 = inlined_call_operand.vmem [shape: f32[1,64], index: 4, kind: input, shape index: {}]   ;;  %s326_s5 = inlined_call_operand.vmem [shape: f32[2,64], index: 5, kind: output, shape index: {}]  }
   0x1   :  { %219 = vmatprep.subr.mxu0 %v247_v0  ;;  %v28_v1 = vld [vmem:[%s321_s1 + $0x38] sm:$0xff]  ;;  %v27_v2 = vld [vmem:[%s321_s1 + $0x30] sm:$0xff]  ;;  %235 = vmatprep.mubr.msk.f32.mxu0 %vm248_vm0, %v247_v0  ;;  %v26_v3 = vld [vmem:[%s321_s1 + $0x28] sm:$0xff]  ;;  %vm197_vm3 = vcmask 517120  }
   0x2   :  { %220 = vmatpush3.msra.mxu0 %v28_v1  ;;  %238 = vmatprep.subr.mxu1 %v247_v0  ;;  %v25_v4 = vld [vmem:[%s321_s1 + $0x20] sm:$0xff]  ;;  %v24_v5 = vld [vmem:[%s321_s1 + $0x18] sm:$0xff]  ;;  %v23_v6 = vld [vmem:[%s321_s1 + $0x10] sm:$0xff] }
   0x3   :  { %221 = vmatprep.subr.mxu0 %v247_v0  ;;  %242 = vmatprep.mubr.msk.f32.mxu1 %vm248_vm0, %v247_v0  ;;  %v22_v7 = vld [vmem:[%s321_s1 + $0x8] sm:$0xff]  ;;  %v21_v8 = vld [vmem:[%s321_s1] sm:$0xff] }
   0x4   :  { %222 = vmatpush3.msra.mxu0 %v27_v2  ;;  %v20_v9 = vld [vmem:[%s322_s0] sm:$0x3]  ;;  %v113_v10 = vld [vmem:[%s323_s3 + $0x8] sm:$0xff] }
   0x5   :  { %223 = vmatprep.subr.mxu0 %v247_v0  ;;  %239 = vmatpush3.msra.mxu1 %v113_v10  ;;  %v112_v11 = vld [vmem:[%s323_s3] sm:$0xff] }
   0x6   :  { %224 = vmatpush3.msra.mxu0 %v26_v3  ;;  %240 = vmatprep.subr.mxu1 %v247_v0  ;;  %v203_v12 = vld [vmem:[%s324_s2] ss:$0 sm:$0xff] }
   0x7   :  { %225 = vmatprep.subr.mxu0 %v247_v0  ;;  %241 = vmatpush3.msra.mxu1 %v112_v11  ;;  %v205_v18 = vld [vmem:[%s325_s4] ss:$0 sm:$0xff] }
   0x8   :  { %226 = vmatpush3.msra.mxu0 %v25_v4 }
   0x9   :  { %227 = vmatprep.subr.mxu0 %v247_v0 }
   0xa   :  { %228 = vmatpush3.msra.mxu0 %v24_v5 }
   0xb   :  { %229 = vmatprep.subr.mxu0 %v247_v0 }
   0xc   :  { %230 = vmatpush3.msra.mxu0 %v23_v6 }
   0xd   :  { %231 = vmatprep.subr.mxu0 %v247_v0 }
   0xe   :  { %232 = vmatpush3.msra.mxu0 %v22_v7 }
   0xf   :  { %233 = vmatprep.subr.mxu0 %v247_v0 }
  0x10   :  { %234 = vmatpush3.msra.mxu0 %v21_v8 }
  0x11   :  { %236 = vmatmul.mubr.msk.f32.vlgmr.msra.gmra.mxu0 %vm36_vm1, %v20_v9 }
  0xd1   :  { %v106_v13 = vpop.f32.mrf.mxu0 }
  0xd2   :  { %v107_v14 = vadd.f32 %v203_v12, %v106_v13 }
  0xd3   :  { %v237_v15 = vpop.f32.mrf.mxu0 }
  0xd4   :  { %v110_v16 = vmax.f32 %v107_v14, 0.0 }
  0xd6   :  { %v111_v17 = vmin.f32 %v110_v16, 6.0 }
  0xd8   :  { %243 = vmatmul.mubr.msk.f32.vlgmr.msra.gmra.mxu1 %vm121_vm2, %v111_v17 }
 0x198   :  { %v191_v19 = vpop.f32.mrf.mxu1 }
 0x199   :  { %v192_v20 = vadd.f32 %v205_v18, %v191_v19 }
 0x19a   :  { %v244_v21 = vpop.f32.mrf.mxu1 }
 0x19b   :  { %v195_v22 = vmax.f32 %v192_v20, 0.0 }
 0x19d   :  { %v196_v23 = vmin.f32 %v195_v22, 6.0 }
 0x19f   :  { %198 = vst.msk [vmem:[%s326_s5] sm:$0x3] %vm197_vm3, %v196_v23 }

// kernel: squeeze_and_excite.3
= control target key start
LH: loop header
LB: loop body
LE: loop exit
PB: predicated region body
PF: predicated region fallthrough
CT: control target
= control target key end

     0   :  { %s1400_s6 = smov 0   ;;  %s1402_s7 = smov 0   ;;  %s1825_s0 = inlined_call_operand.vmem [shape: f32[2,64,16,16], index: 0, kind: input, shape index: {}]   ;;  %s1826_s1 = inlined_call_operand.vmem [shape: f32[2,64,1,1], index: 1, kind: output, shape index: {}]  }
   0x1   :  { %s1404_s8 = smov 0  }
   0x2 LB: > { %s23_s9 = sadd.s32 1, %s1384_s7  ;;  %p1335_p0 = scmp.ge.s32.totalorder %s1388_s8, 1  ;;  %s1388_s8 = sphi %s1404_s8, %s11_s8   ;;  %s1384_s7 = sphi %s1402_s7, %s1828_s7   ;;  %s1380_s6 = sphi %s1400_s6, %s1827_s6  }
   0x3   : > { %p25_p1 = scmp.ge.s32.totalorder %s23_s9, 2  ;;  %p109_p2 = scmp.lt.s32.totalorder %s1388_s8, 3 }
   0x5   : > { %s1830_s9 = smov (%p25_p1, %s23_s9), 0  ;;  %p110_p3 = pnand %p1335_p0, %p109_p2 }
   0x6   : > { %p138_p4 = scmp.lt.s32.totalorder (!%p110_p3), %s1380_s6, 1 }
   0x7   : > { %113 = sbr.rel (%p110_p3) target bundleno = 424 (0x1a8), region = 24 }
   0xc   : > { %s1832_s6 = smov (!%p138_p4, %s1380_s6), 1  ;;  %vm285_vm0 = vcmask 130048   ;;  %vm1182_vm1 = vcmask 0  }
   0xd   : > { %s1341_s10 = sshll.u32 %s1832_s6, 10  ;;  %s1338_s14 = sshll.u32 %s1832_s6, 6 }
   0xe   : > { %s1424_s13 = scalar_lea.vmem %s1825_s0, %s1341_s10  ;;  %s1592_s17 = scalar_lea.vmem %s1826_s1, %s1338_s14 }
   0xf   : > { %v159_v0 = vld [vmem:[%s1424_s13 + $0x10] sm:$0xff]  ;;  %v157_v1 = vld [vmem:[%s1424_s13] sm:$0xff]  ;;  %v160_v2 = vld [vmem:[%s1424_s13 + $0x18] sm:$0xff] }
  0x10   : > { %v292_v3 = vsel %vm285_vm0, %v159_v0, 0.0  ;;  %v286_v4 = vsel %vm285_vm0, %v157_v1, 0.0  ;;  %v158_v5 = vld [vmem:[%s1424_s13 + $0x8] sm:$0xff]  ;;  %v295_v6 = vsel %vm285_vm0, %v160_v2, 0.0  ;;  %v161_v9 = vld [vmem:[%s1424_s13 + $0x20] sm:$0xff]  ;;  %v164_v12 = vld [vmem:[%s1424_s13 + $0x38] sm:$0xff] }
  0x11   : > { %293 = vadd.xlane.f32.xlu1 %v292_v3  ;;  %287 = vadd.xlane.f32.xlu0 %v286_v4  ;;  %v289_v7 = vsel %vm285_vm0, %v158_v5, 0.0  ;;  %v162_v8 = vld [vmem:[%s1424_s13 + $0x28] sm:$0xff]  ;;  %v298_v11 = vsel %vm285_vm0, %v161_v9, 0.0  ;;  %v163_v13 = vld [vmem:[%s1424_s13 + $0x30] sm:$0xff]  ;;  %v307_v14 = vsel %vm285_vm0, %v164_v12, 0.0  ;;  %v165_v17 = vld [vmem:[%s1424_s13 + $0x40] sm:$0xff] }
  0x12   : > { %v301_v10 = vsel %vm285_vm0, %v162_v8, 0.0  ;;  %v304_v15 = vsel %vm285_vm0, %v163_v13, 0.0  ;;  %v166_v16 = vld [vmem:[%s1424_s13 + $0x48] sm:$0xff]  ;;  %v310_v19 = vsel %vm285_vm0, %v165_v17, 0.0  ;;  %v168_v20 = vld [vmem:[%s1424_s13 + $0x58] sm:$0xff]  ;;  %v167_v21 = vld [vmem:[%s1424_s13 + $0x50] sm:$0xff] }
  0x13   : > { %v313_v18 = vsel %vm285_vm0, %v166_v16, 0.0  ;;  %v319_v22 = vsel %vm285_vm0, %v168_v20, 0.0  ;;  %v316_v23 = vsel %vm285_vm0, %v167_v21, 0.0  ;;  %v170_v24 = vld [vmem:[%s1424_s13 + $0x68] sm:$0xff]  ;;  %v169_v25 = vld [vmem:[%s1424_s13 + $0x60] sm:$0xff]  ;;  %v172_v28 = vld [vmem:[%s1424_s13 + $0x78] sm:$0xff] }
  0x14   : > { %v325_v26 = vsel %vm285_vm0, %v170_v24, 0.0  ;;  %v322_v27 = vsel %vm285_vm0, %v169_v25, 0.0  ;;  %v171_v29 = vld [vmem:[%s1424_s13 + $0x70] sm:$0xff]  ;;  %v331_v30 = vsel %vm285_vm0, %v172_v28, 0.0  ;;  %v174_v32 = vld [vmem:[%s1424_s13 + $0x88] sm:$0xff]  ;;  %v173_v33 = vld [vmem:[%s1424_s13 + $0x80] sm:$0xff] }
  0x15   : > { %296 = vadd.xlane.f32.xlu1 %v295_v6  ;;  %290 = vadd.xlane.f32.xlu0 %v289_v7  ;;  %v328_v31 = vsel %vm285_vm0, %v171_v29, 0.0  ;;  %v337_v34 = vsel %vm285_vm0, %v174_v32, 0.0  ;;  %v334_v35 = vsel %vm285_vm0, %v173_v33, 0.0  ;;  %v176_v36 = vld [vmem:[%s1424_s13 + $0x98] sm:$0xff]  ;;  %v175_v37 = vld [vmem:[%s1424_s13 + $0x90] sm:$0xff]  ;;  %v178_v40 = vld [vmem:[%s1424_s13 + $0xa8] sm:$0xff] }
  0x16   : > { %v343_v38 = vsel %vm285_vm0, %v176_v36, 0.0  ;;  %v340_v39 = vsel %vm285_vm0, %v175_v37, 0.0  ;;  %v177_v41 = vld [vmem:[%s1424_s13 + $0xa0] sm:$0xff]  ;;  %v349_v42 = vsel %vm285_vm0, %v178_v40, 0.0  ;;  %v180_v44 = vld [vmem:[%s1424_s13 + $0xb8] sm:$0xff]  ;;  %v179_v45 = vld [vmem:[%s1424_s13 + $0xb0] sm:$0xff] }
  0x17   : > { %v346_v43 = vsel %vm285_vm0, %v177_v41, 0.0  ;;  %v355_v46 = vsel %vm285_vm0, %v180_v44, 0.0  ;;  %v352_v47 = vsel %vm285_vm0, %v179_v45, 0.0  ;;  %v182_v48 = vld [vmem:[%s1424_s13 + $0xc8] sm:$0xff]  ;;  %v181_v49 = vld [vmem:[%s1424_s13 + $0xc0] sm:$0xff]  ;;  %v184_v52 = vld [vmem:[%s1424_s13 + $0xd8] sm:$0xff] }
  0x18   : > { %v361_v50 = vsel %vm285_vm0, %v182_v48, 0.0  ;;  %v358_v51 = vsel %vm285_vm0, %v181_v49, 0.0  ;;  %v183_v53 = vld [vmem:[%s1424_s13 + $0xd0] sm:$0xff]  ;;  %v367_v54 = vsel %vm285_vm0, %v184_v52, 0.0  ;;  %v186_v56 = vld [vmem:[%s1424_s13 + $0xe8] sm:$0xff]  ;;  %v185_v57 = vld [vmem:[%s1424_s13 + $0xe0] sm:$0xff] }
  0x19   : > { %302 = vadd.xlane.f32.xlu1 %v301_v10  ;;  %299 = vadd.xlane.f32.xlu0 %v298_v11  ;;  %v364_v55 = vsel %vm285_vm0, %v183_v53, 0.0  ;;  %v373_v58 = vsel %vm285_vm0, %v186_v56, 0.0  ;;  %v370_v59 = vsel %vm285_vm0, %v185_v57, 0.0  ;;  %v188_v60 = vld [vmem:[%s1424_s13 + $0xf8] sm:$0xff]  ;;  %v187_v61 = vld [vmem:[%s1424_s13 + $0xf0] sm:$0xff]  ;;  %v190_v0 = vld [vmem:[%s1424_s13 + $0x108] sm:$0xff] }
  0x1a   : > { %v379_v62 = vsel %vm285_vm0, %v188_v60, 0.0  ;;  %v376_v63 = vsel %vm285_vm0, %v187_v61, 0.0  ;;  %v189_v1 = vld [vmem:[%s1424_s13 + $0x100] sm:$0xff]  ;;  %v385_v2 = vsel %vm285_vm0, %v190_v0, 0.0  ;;  %v192_v4 = vld [vmem:[%s1424_s13 + $0x118] sm:$0xff]  ;;  %v191_v5 = vld [vmem:[%s1424_s13 + $0x110] sm:$0xff] }
  0x1b   : > { %v382_v3 = vsel %vm285_vm0, %v189_v1, 0.0  ;;  %v391_v6 = vsel %vm285_vm0, %v192_v4, 0.0  ;;  %v388_v7 = vsel %vm285_vm0, %v191_v5, 0.0  ;;  %v194_v8 = vld [vmem:[%s1424_s13 + $0x128] sm:$0xff]  ;;  %v193_v9 = vld [vmem:[%s1424_s13 + $0x120] sm:$0xff]  ;;  %v196_v12 = vld [vmem:[%s1424_s13 + $0x138] sm:$0xff] }
  0x1c   : > { %v397_v10 = vsel %vm285_vm0, %v194_v8, 0.0  ;;  %v394_v11 = vsel %vm285_vm0, %v193_v9, 0.0  ;;  %v195_v13 = vld [vmem:[%s1424_s13 + $0x130] sm:$0xff]  ;;  %v198_v16 = vld [vmem:[%s1424_s13 + $0x148] sm:$0xff]  ;;  %v197_v17 = vld [vmem:[%s1424_s13 + $0x140] sm:$0xff] }
  0x1d   : > { %308 = vadd.xlane.f32.xlu1 %v307_v14  ;;  %305 = vadd.xlane.f32.xlu0 %v304_v15  ;;  %v403_v14 = vsel %vm285_vm0, %v196_v12, 0.0  ;;  %v400_v15 = vsel %vm285_vm0, %v195_v13, 0.0  ;;  %v200_v20 = vld [vmem:[%s1424_s13 + $0x158] sm:$0xff]  ;;  %v199_v21 = vld [vmem:[%s1424_s13 + $0x150] sm:$0xff]  ;;  %v202_v24 = vld [vmem:[%s1424_s13 + $0x168] sm:$0xff] }
  0x1e   : > { %v201_v25 = vld [vmem:[%s1424_s13 + $0x160] sm:$0xff]  ;;  %v204_v28 = vld [vmem:[%s1424_s13 + $0x178] sm:$0xff]  ;;  %v203_v29 = vld [vmem:[%s1424_s13 + $0x170] sm:$0xff] }
  0x1f   : > { %v206_v32 = vld [vmem:[%s1424_s13 + $0x188] sm:$0xff]  ;;  %v205_v33 = vld [vmem:[%s1424_s13 + $0x180] sm:$0xff]  ;;  %v208_v36 = vld [vmem:[%s1424_s13 + $0x198] sm:$0xff] }
  0x20   : > { %v207_v37 = vld [vmem:[%s1424_s13 + $0x190] sm:$0xff]  ;;  %v210_v40 = vld [vmem:[%s1424_s13 + $0x1a8] sm:$0xff]  ;;  %v209_v41 = vld [vmem:[%s1424_s13 + $0x1a0] sm:$0xff] }
  0x21   : > { %314 = vadd.xlane.f32.xlu1 %v313_v18  ;;  %311 = vadd.xlane.f32.xlu0 %v310_v19  ;;  %v409_v18 = vsel %vm285_vm0, %v198_v16, 0.0  ;;  %v406_v19 = vsel %vm285_vm0, %v197_v17, 0.0  ;;  %v212_v44 = vld [vmem:[%s1424_s13 + $0x1b8] sm:$0xff]  ;;  %v211_v45 = vld [vmem:[%s1424_s13 + $0x1b0] sm:$0xff]  ;;  %v214_v48 = vld [vmem:[%s1424_s13 + $0x1c8] sm:$0xff] }
  0x22   : > { %v213_v49 = vld [vmem:[%s1424_s13 + $0x1c0] sm:$0xff]  ;;  %v216_v52 = vld [vmem:[%s1424_s13 + $0x1d8] sm:$0xff]  ;;  %v215_v53 = vld [vmem:[%s1424_s13 + $0x1d0] sm:$0xff] }
  0x23   : > { %v218_v56 = vld [vmem:[%s1424_s13 + $0x1e8] sm:$0xff]  ;;  %v217_v57 = vld [vmem:[%s1424_s13 + $0x1e0] sm:$0xff]  ;;  %v220_v60 = vld [vmem:[%s1424_s13 + $0x1f8] sm:$0xff] }
  0x24   : > { %v219_v61 = vld [vmem:[%s1424_s13 + $0x1f0] sm:$0xff]  ;;  %v222_v0 = vld [vmem:[%s1424_s13 + $0x208] sm:$0xff]  ;;  %v221_v1 = vld [vmem:[%s1424_s13 + $0x200] sm:$0xff] }
  0x25   : > { %320 = vadd.xlane.f32.xlu1 %v319_v22  ;;  %317 = vadd.xlane.f32.xlu0 %v316_v23  ;;  %v415_v22 = vsel %vm285_vm0, %v200_v20, 0.0  ;;  %v412_v23 = vsel %vm285_vm0, %v199_v21, 0.0  ;;  %v224_v4 = vld [vmem:[%s1424_s13 + $0x218] sm:$0xff]  ;;  %v223_v5 = vld [vmem:[%s1424_s13 + $0x210] sm:$0xff]  ;;  %v226_v8 = vld [vmem:[%s1424_s13 + $0x228] sm:$0xff] }
  0x26   : > { %v225_v9 = vld [vmem:[%s1424_s13 + $0x220] sm:$0xff]  ;;  %v228_v12 = vld [vmem:[%s1424_s13 + $0x238] sm:$0xff]  ;;  %v227_v13 = vld [vmem:[%s1424_s13 + $0x230] sm:$0xff] }
  0x27   : > { %v499_v16 = vsel %vm285_vm0, %v228_v12, 0.0  ;;  %v496_v17 = vsel %vm285_vm0, %v227_v13, 0.0 }
  0x29   : > { %326 = vadd.xlane.f32.xlu1 %v325_v26  ;;  %323 = vadd.xlane.f32.xlu0 %v322_v27  ;;  %v421_v26 = vsel %vm285_vm0, %v202_v24, 0.0  ;;  %v418_v27 = vsel %vm285_vm0, %v201_v25, 0.0 }
  0x2d   : > { %332 = vadd.xlane.f32.xlu1 %v331_v30  ;;  %329 = vadd.xlane.f32.xlu0 %v328_v31  ;;  %v427_v30 = vsel %vm285_vm0, %v204_v28, 0.0  ;;  %v424_v31 = vsel %vm285_vm0, %v203_v29, 0.0 }
  0x31   : > { %338 = vadd.xlane.f32.xlu1 %v337_v34  ;;  %335 = vadd.xlane.f32.xlu0 %v334_v35  ;;  %v433_v34 = vsel %vm285_vm0, %v206_v32, 0.0  ;;  %v430_v35 = vsel %vm285_vm0, %v205_v33, 0.0 }
  0x35   : > { %344 = vadd.xlane.f32.xlu1 %v343_v38  ;;  %341 = vadd.xlane.f32.xlu0 %v340_v39  ;;  %v439_v38 = vsel %vm285_vm0, %v208_v36, 0.0  ;;  %v436_v39 = vsel %vm285_vm0, %v207_v37, 0.0  ;;  %v234_v37 = vld [vmem:[%s1424_s13 + $0x268] sm:$0xff] }
  0x39   : > { %350 = vadd.xlane.f32.xlu1 %v349_v42  ;;  %347 = vadd.xlane.f32.xlu0 %v346_v43  ;;  %v445_v42 = vsel %vm285_vm0, %v210_v40, 0.0  ;;  %v442_v43 = vsel %vm285_vm0, %v209_v41, 0.0 }
  0x3d   : > { %356 = vadd.xlane.f32.xlu1 %v355_v46  ;;  %353 = vadd.xlane.f32.xlu0 %v352_v47  ;;  %v451_v46 = vsel %vm285_vm0, %v212_v44, 0.0  ;;  %v448_v47 = vsel %vm285_vm0, %v211_v45, 0.0  ;;  %v517_v44 = vsel %vm285_vm0, %v234_v37, 0.0 }
  0x41   : > { %362 = vadd.xlane.f32.xlu1 %v361_v50  ;;  %359 = vadd.xlane.f32.xlu0 %v358_v51  ;;  %v457_v50 = vsel %vm285_vm0, %v214_v48, 0.0  ;;  %v454_v51 = vsel %vm285_vm0, %v213_v49, 0.0 }
  0x45   : > { %368 = vadd.xlane.f32.xlu1 %v367_v54  ;;  %365 = vadd.xlane.f32.xlu0 %v364_v55  ;;  %v463_v54 = vsel %vm285_vm0, %v216_v52, 0.0  ;;  %v460_v55 = vsel %vm285_vm0, %v215_v53, 0.0 }
  0x49   : > { %374 = vadd.xlane.f32.xlu1 %v373_v58  ;;  %371 = vadd.xlane.f32.xlu0 %v370_v59  ;;  %v469_v58 = vsel %vm285_vm0, %v218_v56, 0.0  ;;  %v466_v59 = vsel %vm285_vm0, %v217_v57, 0.0 }
  0x4d   : > { %380 = vadd.xlane.f32.xlu1 %v379_v62  ;;  %377 = vadd.xlane.f32.xlu0 %v376_v63  ;;  %v475_v62 = vsel %vm285_vm0, %v220_v60, 0.0  ;;  %v472_v63 = vsel %vm285_vm0, %v219_v61, 0.0 }
  0x51   : > { %386 = vadd.xlane.f32.xlu1 %v385_v2  ;;  %383 = vadd.xlane.f32.xlu0 %v382_v3  ;;  %v481_v2 = vsel %vm285_vm0, %v222_v0, 0.0  ;;  %v478_v3 = vsel %vm285_vm0, %v221_v1, 0.0  ;;  %v238_v0 = vld [vmem:[%s1424_s13 + $0x288] sm:$0xff]  ;;  %v237_v1 = vld [vmem:[%s1424_s13 + $0x280] sm:$0xff] }
  0x55   : > { %392 = vadd.xlane.f32.xlu1 %v391_v6  ;;  %389 = vadd.xlane.f32.xlu0 %v388_v7  ;;  %v487_v6 = vsel %vm285_vm0, %v224_v4, 0.0  ;;  %v484_v7 = vsel %vm285_vm0, %v223_v5, 0.0 }
  0x59   : > { %398 = vadd.xlane.f32.xlu1 %v397_v10  ;;  %395 = vadd.xlane.f32.xlu0 %v394_v11  ;;  %v493_v10 = vsel %vm285_vm0, %v226_v8, 0.0  ;;  %v490_v11 = vsel %vm285_vm0, %v225_v9, 0.0 }
  0x5d   : > { %404 = vadd.xlane.f32.xlu1 %v403_v14  ;;  %401 = vadd.xlane.f32.xlu0 %v400_v15 }
  0x61   : > { %410 = vadd.xlane.f32.xlu1 %v409_v18  ;;  %407 = vadd.xlane.f32.xlu0 %v406_v19  ;;  %v230_v18 = vld [vmem:[%s1424_s13 + $0x248] sm:$0xff]  ;;  %v229_v19 = vld [vmem:[%s1424_s13 + $0x240] sm:$0xff] }
  0x65   : > { %416 = vadd.xlane.f32.xlu1 %v415_v22  ;;  %413 = vadd.xlane.f32.xlu0 %v412_v23  ;;  %v505_v22 = vsel %vm285_vm0, %v230_v18, 0.0  ;;  %v502_v23 = vsel %vm285_vm0, %v229_v19, 0.0 }
  0x69   : > { %422 = vadd.xlane.f32.xlu1 %v421_v26  ;;  %419 = vadd.xlane.f32.xlu0 %v418_v27  ;;  %v232_v26 = vld [vmem:[%s1424_s13 + $0x258] sm:$0xff]  ;;  %v231_v27 = vld [vmem:[%s1424_s13 + $0x250] sm:$0xff] }
  0x6a   : > { %v511_v32 = vsel %vm285_vm0, %v232_v26, 0.0  ;;  %v508_v33 = vsel %vm285_vm0, %v231_v27, 0.0 }
  0x6d   : > { %428 = vadd.xlane.f32.xlu1 %v427_v30  ;;  %425 = vadd.xlane.f32.xlu0 %v424_v31 }
  0x71   : > { %434 = vadd.xlane.f32.xlu1 %v433_v34  ;;  %431 = vadd.xlane.f32.xlu0 %v430_v35 }
  0x75   : > { %440 = vadd.xlane.f32.xlu1 %v439_v38  ;;  %437 = vadd.xlane.f32.xlu0 %v436_v39  ;;  %v233_v38 = vld [vmem:[%s1424_s13 + $0x260] sm:$0xff] }
  0x76   : > { %v514_v45 = vsel %vm285_vm0, %v233_v38, 0.0 }
  0x79   : > { %446 = vadd.xlane.f32.xlu1 %v445_v42  ;;  %443 = vadd.xlane.f32.xlu0 %v442_v43 }
  0x7d   : > { %452 = vadd.xlane.f32.xlu1 %v451_v46  ;;  %449 = vadd.xlane.f32.xlu0 %v448_v47 }
  0x81   : > { %458 = vadd.xlane.f32.xlu1 %v457_v50  ;;  %455 = vadd.xlane.f32.xlu0 %v454_v51  ;;  %v236_v50 = vld [vmem:[%s1424_s13 + $0x278] sm:$0xff]  ;;  %v235_v51 = vld [vmem:[%s1424_s13 + $0x270] sm:$0xff] }
  0x85   : > { %464 = vadd.xlane.f32.xlu1 %v463_v54  ;;  %461 = vadd.xlane.f32.xlu0 %v460_v55 }
  0x89   : > { %470 = vadd.xlane.f32.xlu1 %v469_v58  ;;  %467 = vadd.xlane.f32.xlu0 %v466_v59  ;;  %v523_v58 = vsel %vm285_vm0, %v236_v50, 0.0  ;;  %v520_v59 = vsel %vm285_vm0, %v235_v51, 0.0 }
  0x8d   : > { %476 = vadd.xlane.f32.xlu1 %v475_v62  ;;  %473 = vadd.xlane.f32.xlu0 %v472_v63 }
  0x91   : > { %482 = vadd.xlane.f32.xlu1 %v481_v2  ;;  %479 = vadd.xlane.f32.xlu0 %v478_v3 }
  0x95   : > { %488 = vadd.xlane.f32.xlu1 %v487_v6  ;;  %485 = vadd.xlane.f32.xlu0 %v484_v7 }
  0x99   : > { %494 = vadd.xlane.f32.xlu1 %v493_v10  ;;  %491 = vadd.xlane.f32.xlu0 %v490_v11  ;;  %v529_v10 = vsel %vm285_vm0, %v238_v0, 0.0  ;;  %v526_v11 = vsel %vm285_vm0, %v237_v1, 0.0 }
  0x9a   : > { %v294_v14 = vpop.xlane.xlu1 %293  ;;  %v288_v15 = vpop.xlane.xlu0 %287 }
  0x9d   : > { %500 = vadd.xlane.f32.xlu1 %v499_v16  ;;  %497 = vadd.xlane.f32.xlu0 %v496_v17  ;;  %v239_v16 = vld [vmem:[%s1424_s13 + $0x290] sm:$0xff] }
  0x9e   : > { %v297_v20 = vpop.xlane.xlu1 %296  ;;  %v291_v21 = vpop.xlane.xlu0 %290 }
  0x9f   : > { %v677_v24 = vadd.f32 %v297_v20, %v294_v14  ;;  %v670_v25 = vadd.f32 %v291_v21, %v288_v15  ;;  %v240_v15 = vld [vmem:[%s1424_s13 + $0x298] sm:$0xff] }
  0xa1   : > { %v678_v28 = vrot.slane %v677_v24, 4  ;;  %v671_v29 = vrot.slane %v670_v25, 4  ;;  %506 = vadd.xlane.f32.xlu1 %v505_v22  ;;  %503 = vadd.xlane.f32.xlu0 %v502_v23 }
  0xa2   : > { %v303_v30 = vpop.xlane.xlu1 %302  ;;  %v300_v31 = vpop.xlane.xlu0 %299 }
  0xa3   : > { %v679_v34 = vadd.f32 %v678_v28, %v677_v24  ;;  %v672_v35 = vadd.f32 %v671_v29, %v670_v25  ;;  %v684_v36 = vadd.f32 %v303_v30, %v300_v31  ;;  %v535_v24 = vsel %vm285_vm0, %v240_v15, 0.0  ;;  %v242_v29 = vld [vmem:[%s1424_s13 + $0x2a8] sm:$0xff]  ;;  %v241_v30 = vld [vmem:[%s1424_s13 + $0x2a0] sm:$0xff] }
  0xa4   : > { %v532_v25 = vsel %vm285_vm0, %v239_v16, 0.0  ;;  %v541_v38 = vsel %vm285_vm0, %v242_v29, 0.0 }
  0xa5   : > { %v680_v39 = vrot.slane %v679_v34, 2  ;;  %v673_v40 = vrot.slane %v672_v35, 2  ;;  %v685_v41 = vrot.slane %v684_v36, 4  ;;  %512 = vadd.xlane.f32.xlu1 %v511_v32  ;;  %509 = vadd.xlane.f32.xlu0 %v508_v33 }
  0xa6   : > { %v309_v42 = vpop.xlane.xlu1 %308  ;;  %v306_v43 = vpop.xlane.xlu0 %305 }
  0xa7   : > { %v681_v46 = vadd.f32 %v680_v39, %v679_v34  ;;  %v674_v47 = vadd.f32 %v673_v40, %v672_v35  ;;  %v686_v48 = vadd.f32 %v685_v41, %v684_v36  ;;  %v691_v49 = vadd.f32 %v309_v42, %v306_v43  ;;  %v244_v43 = vld [vmem:[%s1424_s13 + $0x2b8] sm:$0xff] }
  0xa8   : > { %v538_v39 = vsel %vm285_vm0, %v241_v30, 0.0 }
  0xa9   : > { %v682_v52 = vrot.slane %v681_v46, 1  ;;  %v675_v53 = vrot.slane %v674_v47, 1  ;;  %v687_v54 = vrot.slane %v686_v48, 2  ;;  %v692_v55 = vrot.slane %v691_v49, 4  ;;  %518 = vadd.xlane.f32.xlu1 %v517_v44  ;;  %515 = vadd.xlane.f32.xlu0 %v514_v45  ;;  %v243_v44 = vld [vmem:[%s1424_s13 + $0x2b0] sm:$0xff] }
  0xaa   : > { %v315_v56 = vpop.xlane.xlu1 %314  ;;  %v312_v57 = vpop.xlane.xlu0 %311 }
  0xab   : > { %v683_v60 = vadd.f32 %v682_v52, %v681_v46  ;;  %v676_v61 = vadd.f32 %v675_v53, %v674_v47  ;;  %v688_v62 = vadd.f32 %v687_v54, %v686_v48  ;;  %v693_v63 = vadd.f32 %v692_v55, %v691_v49 }
  0xac   : > { %v698_v2 = vadd.f32 %v315_v56, %v312_v57  ;;  %v547_v52 = vsel %vm285_vm0, %v244_v43, 0.0  ;;  %v544_v53 = vsel %vm285_vm0, %v243_v44, 0.0 }
  0xad   : > { %v1119_v3 = vmul.f32 0.00390625, %v683_v60  ;;  %v1118_v4 = vmul.f32 0.00390625, %v676_v61  ;;  %v689_v5 = vrot.slane %v688_v62, 1  ;;  %v694_v6 = vrot.slane %v693_v63, 2  ;;  %524 = vadd.xlane.f32.xlu1 %v523_v58  ;;  %521 = vadd.xlane.f32.xlu0 %v520_v59  ;;  %v246_v58 = vld [vmem:[%s1424_s13 + $0x2c8] sm:$0xff]  ;;  %v245_v59 = vld [vmem:[%s1424_s13 + $0x2c0] sm:$0xff] }
  0xae   : > { %v699_v7 = vrot.slane %v698_v2, 4  ;;  %v321_v8 = vpop.xlane.xlu1 %320  ;;  %v318_v9 = vpop.xlane.xlu0 %317 }
  0xaf   : > { %1184 = vst.msk [vmem:[%s1592_s17 + $0x1] sm:$0x1] %vm1182_vm1, %v1119_v3  ;;  %1183 = vst.msk [vmem:[%s1592_s17] sm:$0x1] %vm1182_vm1, %v1118_v4  ;;  %v690_v12 = vadd.f32 %v689_v5, %v688_v62  ;;  %v695_v13 = vadd.f32 %v694_v6, %v693_v63  ;;  %v705_v14 = vadd.f32 %v321_v8, %v318_v9  ;;  %v550_v3 = vsel %vm285_vm0, %v245_v59, 0.0  ;;  %v248_v8 = vld [vmem:[%s1424_s13 + $0x2d8] sm:$0xff] }
  0xb0   : > { %v700_v17 = vadd.f32 %v699_v7, %v698_v2  ;;  %v553_v2 = vsel %vm285_vm0, %v246_v58, 0.0  ;;  %v247_v9 = vld [vmem:[%s1424_s13 + $0x2d0] sm:$0xff]  ;;  %v559_v16 = vsel %vm285_vm0, %v248_v8, 0.0 }
  0xb1   : > { %v1120_v18 = vmul.f32 0.00390625, %v690_v12  ;;  %v696_v19 = vrot.slane %v695_v13, 1  ;;  %v706_v20 = vrot.slane %v705_v14, 4  ;;  %530 = vadd.xlane.f32.xlu1 %v529_v10  ;;  %527 = vadd.xlane.f32.xlu0 %v526_v11 }
  0xb2   : > { %v701_v21 = vrot.slane %v700_v17, 2  ;;  %v327_v22 = vpop.xlane.xlu1 %326  ;;  %v324_v23 = vpop.xlane.xlu0 %323 }
  0xb3   : > { %1185 = vst.msk [vmem:[%s1592_s17 + $0x2] sm:$0x1] %vm1182_vm1, %v1120_v18  ;;  %v697_v26 = vadd.f32 %v696_v19, %v695_v13  ;;  %v707_v27 = vadd.f32 %v706_v20, %v705_v14  ;;  %v712_v28 = vadd.f32 %v327_v22, %v324_v23  ;;  %v250_v22 = vld [vmem:[%s1424_s13 + $0x2e8] sm:$0xff]  ;;  %v249_v23 = vld [vmem:[%s1424_s13 + $0x2e0] sm:$0xff] }
  0xb4   : > { %v702_v31 = vadd.f32 %v701_v21, %v700_v17  ;;  %v556_v17 = vsel %vm285_vm0, %v247_v9, 0.0  ;;  %v565_v30 = vsel %vm285_vm0, %v250_v22, 0.0 }
  0xb5   : > { %v1121_v32 = vmul.f32 0.00390625, %v697_v26  ;;  %v708_v33 = vrot.slane %v707_v27, 2  ;;  %v713_v34 = vrot.slane %v712_v28, 4  ;;  %536 = vadd.xlane.f32.xlu1 %v535_v24  ;;  %533 = vadd.xlane.f32.xlu0 %v532_v25 }
  0xb6   : > { %v703_v35 = vrot.slane %v702_v31, 1  ;;  %v333_v36 = vpop.xlane.xlu1 %332  ;;  %v330_v37 = vpop.xlane.xlu0 %329 }
  0xb7   : > { %1186 = vst.msk [vmem:[%s1592_s17 + $0x3] sm:$0x1] %vm1182_vm1, %v1121_v32  ;;  %v709_v40 = vadd.f32 %v708_v33, %v707_v27  ;;  %v714_v41 = vadd.f32 %v713_v34, %v712_v28  ;;  %v719_v42 = vadd.f32 %v333_v36, %v330_v37  ;;  %v252_v36 = vld [vmem:[%s1424_s13 + $0x2f8] sm:$0xff]  ;;  %v251_v37 = vld [vmem:[%s1424_s13 + $0x2f0] sm:$0xff] }
  0xb8   : > { %v704_v45 = vadd.f32 %v703_v35, %v702_v31  ;;  %v562_v31 = vsel %vm285_vm0, %v249_v23, 0.0  ;;  %v571_v44 = vsel %vm285_vm0, %v252_v36, 0.0 }
  0xb9   : > { %v710_v46 = vrot.slane %v709_v40, 1  ;;  %v715_v47 = vrot.slane %v714_v41, 2  ;;  %v720_v48 = vrot.slane %v719_v42, 4  ;;  %542 = vadd.xlane.f32.xlu1 %v541_v38  ;;  %539 = vadd.xlane.f32.xlu0 %v538_v39 }
  0xba   : > { %v1122_v49 = vmul.f32 0.00390625, %v704_v45  ;;  %v339_v50 = vpop.xlane.xlu1 %338  ;;  %v336_v51 = vpop.xlane.xlu0 %335  ;;  %v568_v45 = vsel %vm285_vm0, %v251_v37, 0.0 }
  0xbb   : > { %v711_v54 = vadd.f32 %v710_v46, %v709_v40  ;;  %v716_v55 = vadd.f32 %v715_v47, %v714_v41  ;;  %v721_v56 = vadd.f32 %v720_v48, %v719_v42  ;;  %v726_v57 = vadd.f32 %v339_v50, %v336_v51  ;;  %v254_v50 = vld [vmem:[%s1424_s13 + $0x308] sm:$0xff]  ;;  %v253_v51 = vld [vmem:[%s1424_s13 + $0x300] sm:$0xff] }
  0xbc   : > { %1187 = vst.msk [vmem:[%s1592_s17 + $0x4] sm:$0x1] %vm1182_vm1, %v1122_v49  ;;  %v577_v58 = vsel %vm285_vm0, %v254_v50, 0.0  ;;  %v574_v59 = vsel %vm285_vm0, %v253_v51, 0.0 }
  0xbd   : > { %v1123_v60 = vmul.f32 0.00390625, %v711_v54  ;;  %v717_v61 = vrot.slane %v716_v55, 1  ;;  %v722_v62 = vrot.slane %v721_v56, 2  ;;  %v727_v63 = vrot.slane %v726_v57, 4  ;;  %548 = vadd.xlane.f32.xlu1 %v547_v52  ;;  %545 = vadd.xlane.f32.xlu0 %v544_v53 }
  0xbe   : > { %v345_v0 = vpop.xlane.xlu1 %344  ;;  %v342_v1 = vpop.xlane.xlu0 %341 }
  0xbf   : > { %1188 = vst.msk [vmem:[%s1592_s17 + $0x5] sm:$0x1] %vm1182_vm1, %v1123_v60  ;;  %v718_v4 = vadd.f32 %v717_v61, %v716_v55  ;;  %v723_v5 = vadd.f32 %v722_v62, %v721_v56  ;;  %v728_v6 = vadd.f32 %v727_v63, %v726_v57  ;;  %v733_v7 = vadd.f32 %v345_v0, %v342_v1  ;;  %v256_v0 = vld [vmem:[%s1424_s13 + $0x318] sm:$0xff]  ;;  %v255_v1 = vld [vmem:[%s1424_s13 + $0x310] sm:$0xff] }
  0xc0   : > { %v583_v8 = vsel %vm285_vm0, %v256_v0, 0.0  ;;  %v580_v9 = vsel %vm285_vm0, %v255_v1, 0.0 }
  0xc1   : > { %v1124_v10 = vmul.f32 0.00390625, %v718_v4  ;;  %v724_v11 = vrot.slane %v723_v5, 1  ;;  %v729_v12 = vrot.slane %v728_v6, 2  ;;  %v734_v13 = vrot.slane %v733_v7, 4  ;;  %554 = vadd.xlane.f32.xlu1 %v553_v2  ;;  %551 = vadd.xlane.f32.xlu0 %v550_v3 }
  0xc2   : > { %v351_v14 = vpop.xlane.xlu1 %350  ;;  %v348_v15 = vpop.xlane.xlu0 %347 }
  0xc3   : > { %1189 = vst.msk [vmem:[%s1592_s17 + $0x6] sm:$0x1] %vm1182_vm1, %v1124_v10  ;;  %v725_v18 = vadd.f32 %v724_v11, %v723_v5  ;;  %v730_v19 = vadd.f32 %v729_v12, %v728_v6  ;;  %v735_v20 = vadd.f32 %v734_v13, %v733_v7  ;;  %v740_v21 = vadd.f32 %v351_v14, %v348_v15  ;;  %v258_v14 = vld [vmem:[%s1424_s13 + $0x328] sm:$0xff]  ;;  %v257_v15 = vld [vmem:[%s1424_s13 + $0x320] sm:$0xff] }
  0xc4   : > { %v589_v22 = vsel %vm285_vm0, %v258_v14, 0.0  ;;  %v586_v23 = vsel %vm285_vm0, %v257_v15, 0.0 }
  0xc5   : > { %v1125_v24 = vmul.f32 0.00390625, %v725_v18  ;;  %v731_v25 = vrot.slane %v730_v19, 1  ;;  %v736_v26 = vrot.slane %v735_v20, 2  ;;  %v741_v27 = vrot.slane %v740_v21, 4  ;;  %560 = vadd.xlane.f32.xlu1 %v559_v16  ;;  %557 = vadd.xlane.f32.xlu0 %v556_v17 }
  0xc6   : > { %v357_v28 = vpop.xlane.xlu1 %356  ;;  %v354_v29 = vpop.xlane.xlu0 %353 }
  0xc7   : > { %1190 = vst.msk [vmem:[%s1592_s17 + $0x7] sm:$0x1] %vm1182_vm1, %v1125_v24  ;;  %v732_v32 = vadd.f32 %v731_v25, %v730_v19  ;;  %v737_v33 = vadd.f32 %v736_v26, %v735_v20  ;;  %v742_v34 = vadd.f32 %v741_v27, %v740_v21  ;;  %v747_v35 = vadd.f32 %v357_v28, %v354_v29  ;;  %v260_v28 = vld [vmem:[%s1424_s13 + $0x338] sm:$0xff]  ;;  %v259_v29 = vld [vmem:[%s1424_s13 + $0x330] sm:$0xff] }
  0xc8   : > { %v595_v36 = vsel %vm285_vm0, %v260_v28, 0.0  ;;  %v592_v37 = vsel %vm285_vm0, %v259_v29, 0.0 }
  0xc9   : > { %v1126_v38 = vmul.f32 0.00390625, %v732_v32  ;;  %v738_v39 = vrot.slane %v737_v33, 1  ;;  %v743_v40 = vrot.slane %v742_v34, 2  ;;  %v748_v41 = vrot.slane %v747_v35, 4  ;;  %566 = vadd.xlane.f32.xlu1 %v565_v30  ;;  %563 = vadd.xlane.f32.xlu0 %v562_v31 }
  0xca   : > { %v363_v42 = vpop.xlane.xlu1 %362  ;;  %v360_v43 = vpop.xlane.xlu0 %359 }
  0xcb   : > { %1191 = vst.msk [vmem:[%s1592_s17 + $0x8] sm:$0x1] %vm1182_vm1, %v1126_v38  ;;  %v739_v46 = vadd.f32 %v738_v39, %v737_v33  ;;  %v744_v47 = vadd.f32 %v743_v40, %v742_v34  ;;  %v749_v48 = vadd.f32 %v748_v41, %v747_v35  ;;  %v754_v49 = vadd.f32 %v363_v42, %v360_v43  ;;  %v262_v42 = vld [vmem:[%s1424_s13 + $0x348] sm:$0xff]  ;;  %v261_v43 = vld [vmem:[%s1424_s13 + $0x340] sm:$0xff] }
  0xcc   : > { %v601_v50 = vsel %vm285_vm0, %v262_v42, 0.0  ;;  %v598_v51 = vsel %vm285_vm0, %v261_v43, 0.0 }
  0xcd   : > { %v1127_v52 = vmul.f32 0.00390625, %v739_v46  ;;  %v745_v53 = vrot.slane %v744_v47, 1  ;;  %v750_v54 = vrot.slane %v749_v48, 2  ;;  %v755_v55 = vrot.slane %v754_v49, 4  ;;  %572 = vadd.xlane.f32.xlu1 %v571_v44  ;;  %569 = vadd.xlane.f32.xlu0 %v568_v45 }
  0xce   : > { %v369_v56 = vpop.xlane.xlu1 %368  ;;  %v366_v57 = vpop.xlane.xlu0 %365 }
  0xcf   : > { %1192 = vst.msk [vmem:[%s1592_s17 + $0x9] sm:$0x1] %vm1182_vm1, %v1127_v52  ;;  %v746_v60 = vadd.f32 %v745_v53, %v744_v47  ;;  %v751_v61 = vadd.f32 %v750_v54, %v749_v48  ;;  %v756_v62 = vadd.f32 %v755_v55, %v754_v49  ;;  %v761_v63 = vadd.f32 %v369_v56, %v366_v57  ;;  %v264_v56 = vld [vmem:[%s1424_s13 + $0x358] sm:$0xff]  ;;  %v263_v57 = vld [vmem:[%s1424_s13 + $0x350] sm:$0xff] }
  0xd0   : > { %v607_v0 = vsel %vm285_vm0, %v264_v56, 0.0  ;;  %v604_v1 = vsel %vm285_vm0, %v263_v57, 0.0 }
  0xd1   : > { %v1128_v2 = vmul.f32 0.00390625, %v746_v60  ;;  %v752_v3 = vrot.slane %v751_v61, 1  ;;  %v757_v4 = vrot.slane %v756_v62, 2  ;;  %v762_v5 = vrot.slane %v761_v63, 4  ;;  %578 = vadd.xlane.f32.xlu1 %v577_v58  ;;  %575 = vadd.xlane.f32.xlu0 %v574_v59 }
  0xd2   : > { %v375_v6 = vpop.xlane.xlu1 %374  ;;  %v372_v7 = vpop.xlane.xlu0 %371 }
  0xd3   : > { %1193 = vst.msk [vmem:[%s1592_s17 + $0xa] sm:$0x1] %vm1182_vm1, %v1128_v2  ;;  %v753_v10 = vadd.f32 %v752_v3, %v751_v61  ;;  %v758_v11 = vadd.f32 %v757_v4, %v756_v62  ;;  %v763_v12 = vadd.f32 %v762_v5, %v761_v63  ;;  %v768_v13 = vadd.f32 %v375_v6, %v372_v7  ;;  %v266_v6 = vld [vmem:[%s1424_s13 + $0x368] sm:$0xff]  ;;  %v265_v7 = vld [vmem:[%s1424_s13 + $0x360] sm:$0xff] }
  0xd4   : > { %v613_v14 = vsel %vm285_vm0, %v266_v6, 0.0  ;;  %v610_v15 = vsel %vm285_vm0, %v265_v7, 0.0 }
  0xd5   : > { %v1129_v16 = vmul.f32 0.00390625, %v753_v10  ;;  %v759_v17 = vrot.slane %v758_v11, 1  ;;  %v764_v18 = vrot.slane %v763_v12, 2  ;;  %v769_v19 = vrot.slane %v768_v13, 4  ;;  %584 = vadd.xlane.f32.xlu1 %v583_v8  ;;  %581 = vadd.xlane.f32.xlu0 %v580_v9 }
  0xd6   : > { %v381_v20 = vpop.xlane.xlu1 %380  ;;  %v378_v21 = vpop.xlane.xlu0 %377 }
  0xd7   : > { %1194 = vst.msk [vmem:[%s1592_s17 + $0xb] sm:$0x1] %vm1182_vm1, %v1129_v16  ;;  %v760_v24 = vadd.f32 %v759_v17, %v758_v11  ;;  %v765_v25 = vadd.f32 %v764_v18, %v763_v12  ;;  %v770_v26 = vadd.f32 %v769_v19, %v768_v13  ;;  %v775_v27 = vadd.f32 %v381_v20, %v378_v21  ;;  %v268_v20 = vld [vmem:[%s1424_s13 + $0x378] sm:$0xff]  ;;  %v267_v21 = vld [vmem:[%s1424_s13 + $0x370] sm:$0xff] }
  0xd8   : > { %v619_v28 = vsel %vm285_vm0, %v268_v20, 0.0  ;;  %v616_v29 = vsel %vm285_vm0, %v267_v21, 0.0 }
  0xd9   : > { %v1130_v30 = vmul.f32 0.00390625, %v760_v24  ;;  %v766_v31 = vrot.slane %v765_v25, 1  ;;  %v771_v32 = vrot.slane %v770_v26, 2  ;;  %v776_v33 = vrot.slane %v775_v27, 4  ;;  %590 = vadd.xlane.f32.xlu1 %v589_v22  ;;  %587 = vadd.xlane.f32.xlu0 %v586_v23 }
  0xda   : > { %v387_v34 = vpop.xlane.xlu1 %386  ;;  %v384_v35 = vpop.xlane.xlu0 %383 }
  0xdb   : > { %1195 = vst.msk [vmem:[%s1592_s17 + $0xc] sm:$0x1] %vm1182_vm1, %v1130_v30  ;;  %v767_v38 = vadd.f32 %v766_v31, %v765_v25  ;;  %v772_v39 = vadd.f32 %v771_v32, %v770_v26  ;;  %v777_v40 = vadd.f32 %v776_v33, %v775_v27  ;;  %v782_v41 = vadd.f32 %v387_v34, %v384_v35  ;;  %v270_v34 = vld [vmem:[%s1424_s13 + $0x388] sm:$0xff]  ;;  %v269_v35 = vld [vmem:[%s1424_s13 + $0x380] sm:$0xff] }
  0xdc   : > { %v625_v42 = vsel %vm285_vm0, %v270_v34, 0.0  ;;  %v622_v43 = vsel %vm285_vm0, %v269_v35, 0.0 }
  0xdd   : > { %v1131_v44 = vmul.f32 0.00390625, %v767_v38  ;;  %v773_v45 = vrot.slane %v772_v39, 1  ;;  %v778_v46 = vrot.slane %v777_v40, 2  ;;  %v783_v47 = vrot.slane %v782_v41, 4  ;;  %596 = vadd.xlane.f32.xlu1 %v595_v36  ;;  %593 = vadd.xlane.f32.xlu0 %v592_v37 }
  0xde   : > { %v393_v48 = vpop.xlane.xlu1 %392  ;;  %v390_v49 = vpop.xlane.xlu0 %389 }
  0xdf   : > { %1196 = vst.msk [vmem:[%s1592_s17 + $0xd] sm:$0x1] %vm1182_vm1, %v1131_v44  ;;  %v774_v52 = vadd.f32 %v773_v45, %v772_v39  ;;  %v779_v53 = vadd.f32 %v778_v46, %v777_v40  ;;  %v784_v54 = vadd.f32 %v783_v47, %v782_v41  ;;  %v789_v55 = vadd.f32 %v393_v48, %v390_v49  ;;  %v272_v48 = vld [vmem:[%s1424_s13 + $0x398] sm:$0xff]  ;;  %v271_v49 = vld [vmem:[%s1424_s13 + $0x390] sm:$0xff] }
  0xe0   : > { %v631_v56 = vsel %vm285_vm0, %v272_v48, 0.0  ;;  %v628_v57 = vsel %vm285_vm0, %v271_v49, 0.0 }
  0xe1   : > { %v1132_v58 = vmul.f32 0.00390625, %v774_v52  ;;  %v780_v59 = vrot.slane %v779_v53, 1  ;;  %v785_v60 = vrot.slane %v784_v54, 2  ;;  %v790_v61 = vrot.slane %v789_v55, 4  ;;  %602 = vadd.xlane.f32.xlu1 %v601_v50  ;;  %599 = vadd.xlane.f32.xlu0 %v598_v51 }
  0xe2   : > { %v399_v62 = vpop.xlane.xlu1 %398  ;;  %v396_v63 = vpop.xlane.xlu0 %395 }
  0xe3   : > { %1197 = vst.msk [vmem:[%s1592_s17 + $0xe] sm:$0x1] %vm1182_vm1, %v1132_v58  ;;  %v781_v2 = vadd.f32 %v780_v59, %v779_v53  ;;  %v786_v3 = vadd.f32 %v785_v60, %v784_v54  ;;  %v791_v4 = vadd.f32 %v790_v61, %v789_v55  ;;  %v796_v5 = vadd.f32 %v399_v62, %v396_v63  ;;  %v274_v62 = vld [vmem:[%s1424_s13 + $0x3a8] sm:$0xff]  ;;  %v273_v63 = vld [vmem:[%s1424_s13 + $0x3a0] sm:$0xff] }
  0xe4   : > { %v637_v6 = vsel %vm285_vm0, %v274_v62, 0.0  ;;  %v634_v7 = vsel %vm285_vm0, %v273_v63, 0.0 }
  0xe5   : > { %v1133_v8 = vmul.f32 0.00390625, %v781_v2  ;;  %v787_v9 = vrot.slane %v786_v3, 1  ;;  %v792_v10 = vrot.slane %v791_v4, 2  ;;  %v797_v11 = vrot.slane %v796_v5, 4  ;;  %608 = vadd.xlane.f32.xlu1 %v607_v0  ;;  %605 = vadd.xlane.f32.xlu0 %v604_v1 }
  0xe6   : > { %v405_v12 = vpop.xlane.xlu1 %404  ;;  %v402_v13 = vpop.xlane.xlu0 %401 }
  0xe7   : > { %1198 = vst.msk [vmem:[%s1592_s17 + $0xf] sm:$0x1] %vm1182_vm1, %v1133_v8  ;;  %v788_v16 = vadd.f32 %v787_v9, %v786_v3  ;;  %v793_v17 = vadd.f32 %v792_v10, %v791_v4  ;;  %v798_v18 = vadd.f32 %v797_v11, %v796_v5  ;;  %v803_v19 = vadd.f32 %v405_v12, %v402_v13  ;;  %v276_v12 = vld [vmem:[%s1424_s13 + $0x3b8] sm:$0xff]  ;;  %v275_v13 = vld [vmem:[%s1424_s13 + $0x3b0] sm:$0xff] }
  0xe8   : > { %v643_v20 = vsel %vm285_vm0, %v276_v12, 0.0  ;;  %v640_v21 = vsel %vm285_vm0, %v275_v13, 0.0 }
  0xe9   : > { %v1134_v22 = vmul.f32 0.00390625, %v788_v16  ;;  %v794_v23 = vrot.slane %v793_v17, 1  ;;  %v799_v24 = vrot.slane %v798_v18, 2  ;;  %v804_v25 = vrot.slane %v803_v19, 4  ;;  %614 = vadd.xlane.f32.xlu1 %v613_v14  ;;  %611 = vadd.xlane.f32.xlu0 %v610_v15 }
  0xea   : > { %v411_v26 = vpop.xlane.xlu1 %410  ;;  %v408_v27 = vpop.xlane.xlu0 %407 }
  0xeb   : > { %1199 = vst.msk [vmem:[%s1592_s17 + $0x10] sm:$0x1] %vm1182_vm1, %v1134_v22  ;;  %v795_v30 = vadd.f32 %v794_v23, %v793_v17  ;;  %v800_v31 = vadd.f32 %v799_v24, %v798_v18  ;;  %v805_v32 = vadd.f32 %v804_v25, %v803_v19  ;;  %v810_v33 = vadd.f32 %v411_v26, %v408_v27  ;;  %v278_v26 = vld [vmem:[%s1424_s13 + $0x3c8] sm:$0xff]  ;;  %v277_v27 = vld [vmem:[%s1424_s13 + $0x3c0] sm:$0xff] }
  0xec   : > { %v649_v34 = vsel %vm285_vm0, %v278_v26, 0.0  ;;  %v646_v35 = vsel %vm285_vm0, %v277_v27, 0.0 }
  0xed   : > { %v1135_v36 = vmul.f32 0.00390625, %v795_v30  ;;  %v801_v37 = vrot.slane %v800_v31, 1  ;;  %v806_v38 = vrot.slane %v805_v32, 2  ;;  %v811_v39 = vrot.slane %v810_v33, 4  ;;  %620 = vadd.xlane.f32.xlu1 %v619_v28  ;;  %617 = vadd.xlane.f32.xlu0 %v616_v29 }
  0xee   : > { %v417_v40 = vpop.xlane.xlu1 %416  ;;  %v414_v41 = vpop.xlane.xlu0 %413 }
  0xef   : > { %1200 = vst.msk [vmem:[%s1592_s17 + $0x11] sm:$0x1] %vm1182_vm1, %v1135_v36  ;;  %v802_v44 = vadd.f32 %v801_v37, %v800_v31  ;;  %v807_v45 = vadd.f32 %v806_v38, %v805_v32  ;;  %v812_v46 = vadd.f32 %v811_v39, %v810_v33  ;;  %v817_v47 = vadd.f32 %v417_v40, %v414_v41  ;;  %v280_v40 = vld [vmem:[%s1424_s13 + $0x3d8] sm:$0xff]  ;;  %v279_v41 = vld [vmem:[%s1424_s13 + $0x3d0] sm:$0xff] }
  0xf0   : > { %v655_v48 = vsel %vm285_vm0, %v280_v40, 0.0  ;;  %v652_v49 = vsel %vm285_vm0, %v279_v41, 0.0 }
  0xf1   : > { %v1136_v50 = vmul.f32 0.00390625, %v802_v44  ;;  %v808_v51 = vrot.slane %v807_v45, 1  ;;  %v813_v52 = vrot.slane %v812_v46, 2  ;;  %v818_v53 = vrot.slane %v817_v47, 4  ;;  %626 = vadd.xlane.f32.xlu1 %v625_v42  ;;  %623 = vadd.xlane.f32.xlu0 %v622_v43 }
  0xf2   : > { %v423_v54 = vpop.xlane.xlu1 %422  ;;  %v420_v55 = vpop.xlane.xlu0 %419 }
  0xf3   : > { %1201 = vst.msk [vmem:[%s1592_s17 + $0x12] sm:$0x1] %vm1182_vm1, %v1136_v50  ;;  %v809_v58 = vadd.f32 %v808_v51, %v807_v45  ;;  %v814_v59 = vadd.f32 %v813_v52, %v812_v46  ;;  %v819_v60 = vadd.f32 %v818_v53, %v817_v47  ;;  %v824_v61 = vadd.f32 %v423_v54, %v420_v55  ;;  %v282_v54 = vld [vmem:[%s1424_s13 + $0x3e8] sm:$0xff]  ;;  %v281_v55 = vld [vmem:[%s1424_s13 + $0x3e0] sm:$0xff] }
  0xf4   : > { %v661_v62 = vsel %vm285_vm0, %v282_v54, 0.0  ;;  %v658_v63 = vsel %vm285_vm0, %v281_v55, 0.0 }
  0xf5   : > { %v1137_v0 = vmul.f32 0.00390625, %v809_v58  ;;  %v815_v1 = vrot.slane %v814_v59, 1  ;;  %v820_v2 = vrot.slane %v819_v60, 2  ;;  %v825_v3 = vrot.slane %v824_v61, 4  ;;  %632 = vadd.xlane.f32.xlu1 %v631_v56  ;;  %629 = vadd.xlane.f32.xlu0 %v628_v57 }
  0xf6   : > { %v429_v4 = vpop.xlane.xlu1 %428  ;;  %v426_v5 = vpop.xlane.xlu0 %425 }
  0xf7   : > { %1202 = vst.msk [vmem:[%s1592_s17 + $0x13] sm:$0x1] %vm1182_vm1, %v1137_v0  ;;  %v816_v8 = vadd.f32 %v815_v1, %v814_v59  ;;  %v821_v9 = vadd.f32 %v820_v2, %v819_v60  ;;  %v826_v10 = vadd.f32 %v825_v3, %v824_v61  ;;  %v831_v11 = vadd.f32 %v429_v4, %v426_v5  ;;  %v284_v4 = vld [vmem:[%s1424_s13 + $0x3f8] sm:$0xff]  ;;  %v283_v5 = vld [vmem:[%s1424_s13 + $0x3f0] sm:$0xff] }
  0xf8   : > { %v667_v12 = vsel %vm285_vm0, %v284_v4, 0.0  ;;  %v664_v13 = vsel %vm285_vm0, %v283_v5, 0.0 }
  0xf9   : > { %v1138_v14 = vmul.f32 0.00390625, %v816_v8  ;;  %v822_v15 = vrot.slane %v821_v9, 1  ;;  %v827_v16 = vrot.slane %v826_v10, 2  ;;  %v832_v17 = vrot.slane %v831_v11, 4  ;;  %638 = vadd.xlane.f32.xlu1 %v637_v6  ;;  %635 = vadd.xlane.f32.xlu0 %v634_v7 }
  0xfa   : > { %v435_v18 = vpop.xlane.xlu1 %434  ;;  %v432_v19 = vpop.xlane.xlu0 %431 }
  0xfb   : > { %1203 = vst.msk [vmem:[%s1592_s17 + $0x14] sm:$0x1] %vm1182_vm1, %v1138_v14  ;;  %v823_v22 = vadd.f32 %v822_v15, %v821_v9  ;;  %v828_v23 = vadd.f32 %v827_v16, %v826_v10  ;;  %v833_v24 = vadd.f32 %v832_v17, %v831_v11  ;;  %v838_v25 = vadd.f32 %v435_v18, %v432_v19 }
  0xfd   : > { %v1139_v28 = vmul.f32 0.00390625, %v823_v22  ;;  %v829_v29 = vrot.slane %v828_v23, 1  ;;  %v834_v30 = vrot.slane %v833_v24, 2  ;;  %v839_v31 = vrot.slane %v838_v25, 4  ;;  %644 = vadd.xlane.f32.xlu1 %v643_v20  ;;  %641 = vadd.xlane.f32.xlu0 %v640_v21 }
  0xfe   : > { %v441_v32 = vpop.xlane.xlu1 %440  ;;  %v438_v33 = vpop.xlane.xlu0 %437 }
  0xff   : > { %1204 = vst.msk [vmem:[%s1592_s17 + $0x15] sm:$0x1] %vm1182_vm1, %v1139_v28  ;;  %v830_v36 = vadd.f32 %v829_v29, %v828_v23  ;;  %v835_v37 = vadd.f32 %v834_v30, %v833_v24  ;;  %v840_v38 = vadd.f32 %v839_v31, %v838_v25  ;;  %v845_v39 = vadd.f32 %v441_v32, %v438_v33 }
 0x101   : > { %v1140_v42 = vmul.f32 0.00390625, %v830_v36  ;;  %v836_v43 = vrot.slane %v835_v37, 1  ;;  %v841_v44 = vrot.slane %v840_v38, 2  ;;  %v846_v45 = vrot.slane %v845_v39, 4  ;;  %650 = vadd.xlane.f32.xlu1 %v649_v34  ;;  %647 = vadd.xlane.f32.xlu0 %v646_v35 }
 0x102   : > { %v447_v46 = vpop.xlane.xlu1 %446  ;;  %v444_v47 = vpop.xlane.xlu0 %443 }
 0x103   : > { %1205 = vst.msk [vmem:[%s1592_s17 + $0x16] sm:$0x1] %vm1182_vm1, %v1140_v42  ;;  %v837_v50 = vadd.f32 %v836_v43, %v835_v37  ;;  %v842_v51 = vadd.f32 %v841_v44, %v840_v38  ;;  %v847_v52 = vadd.f32 %v846_v45, %v845_v39  ;;  %v852_v53 = vadd.f32 %v447_v46, %v444_v47 }
 0x105   : > { %v1141_v56 = vmul.f32 0.00390625, %v837_v50  ;;  %v843_v57 = vrot.slane %v842_v51, 1  ;;  %v848_v58 = vrot.slane %v847_v52, 2  ;;  %v853_v59 = vrot.slane %v852_v53, 4  ;;  %656 = vadd.xlane.f32.xlu1 %v655_v48  ;;  %653 = vadd.xlane.f32.xlu0 %v652_v49 }
 0x106   : > { %v453_v60 = vpop.xlane.xlu1 %452  ;;  %v450_v61 = vpop.xlane.xlu0 %449 }
 0x107   : > { %1206 = vst.msk [vmem:[%s1592_s17 + $0x17] sm:$0x1] %vm1182_vm1, %v1141_v56  ;;  %v844_v0 = vadd.f32 %v843_v57, %v842_v51  ;;  %v849_v1 = vadd.f32 %v848_v58, %v847_v52  ;;  %v854_v2 = vadd.f32 %v853_v59, %v852_v53  ;;  %v859_v3 = vadd.f32 %v453_v60, %v450_v61 }
 0x109   : > { %v1142_v6 = vmul.f32 0.00390625, %v844_v0  ;;  %v850_v7 = vrot.slane %v849_v1, 1  ;;  %v855_v8 = vrot.slane %v854_v2, 2  ;;  %v860_v9 = vrot.slane %v859_v3, 4  ;;  %662 = vadd.xlane.f32.xlu1 %v661_v62  ;;  %659 = vadd.xlane.f32.xlu0 %v658_v63 }
 0x10a   : > { %v459_v10 = vpop.xlane.xlu1 %458  ;;  %v456_v11 = vpop.xlane.xlu0 %455 }
 0x10b   : > { %1207 = vst.msk [vmem:[%s1592_s17 + $0x18] sm:$0x1] %vm1182_vm1, %v1142_v6  ;;  %v851_v14 = vadd.f32 %v850_v7, %v849_v1  ;;  %v856_v15 = vadd.f32 %v855_v8, %v854_v2  ;;  %v861_v16 = vadd.f32 %v860_v9, %v859_v3  ;;  %v866_v17 = vadd.f32 %v459_v10, %v456_v11 }
 0x10d   : > { %v1143_v18 = vmul.f32 0.00390625, %v851_v14  ;;  %v857_v19 = vrot.slane %v856_v15, 1  ;;  %v862_v20 = vrot.slane %v861_v16, 2  ;;  %v867_v21 = vrot.slane %v866_v17, 4  ;;  %668 = vadd.xlane.f32.xlu1 %v667_v12  ;;  %665 = vadd.xlane.f32.xlu0 %v664_v13 }
 0x10e   : > { %v465_v22 = vpop.xlane.xlu1 %464  ;;  %v462_v23 = vpop.xlane.xlu0 %461 }
 0x10f   : > { %1208 = vst.msk [vmem:[%s1592_s17 + $0x19] sm:$0x1] %vm1182_vm1, %v1143_v18  ;;  %v858_v24 = vadd.f32 %v857_v19, %v856_v15  ;;  %v863_v25 = vadd.f32 %v862_v20, %v861_v16  ;;  %v868_v26 = vadd.f32 %v867_v21, %v866_v17  ;;  %v873_v27 = vadd.f32 %v465_v22, %v462_v23 }
 0x111   : > { %v1144_v28 = vmul.f32 0.00390625, %v858_v24  ;;  %v864_v29 = vrot.slane %v863_v25, 1  ;;  %v869_v30 = vrot.slane %v868_v26, 2  ;;  %v874_v31 = vrot.slane %v873_v27, 4 }
 0x112   : > { %v471_v32 = vpop.xlane.xlu1 %470  ;;  %v468_v33 = vpop.xlane.xlu0 %467 }
 0x113   : > { %1209 = vst.msk [vmem:[%s1592_s17 + $0x1a] sm:$0x1] %vm1182_vm1, %v1144_v28  ;;  %v865_v34 = vadd.f32 %v864_v29, %v863_v25  ;;  %v870_v35 = vadd.f32 %v869_v30, %v868_v26  ;;  %v875_v36 = vadd.f32 %v874_v31, %v873_v27  ;;  %v880_v37 = vadd.f32 %v471_v32, %v468_v33 }
 0x115   : > { %v1145_v38 = vmul.f32 0.00390625, %v865_v34  ;;  %v871_v39 = vrot.slane %v870_v35, 1  ;;  %v876_v40 = vrot.slane %v875_v36, 2  ;;  %v881_v41 = vrot.slane %v880_v37, 4 }
 0x116   : > { %v477_v42 = vpop.xlane.xlu1 %476  ;;  %v474_v43 = vpop.xlane.xlu0 %473 }
 0x117   : > { %1210 = vst.msk [vmem:[%s1592_s17 + $0x1b] sm:$0x1] %vm1182_vm1, %v1145_v38  ;;  %v872_v44 = vadd.f32 %v871_v39, %v870_v35  ;;  %v877_v45 = vadd.f32 %v876_v40, %v875_v36  ;;  %v882_v46 = vadd.f32 %v881_v41, %v880_v37  ;;  %v887_v47 = vadd.f32 %v477_v42, %v474_v43 }
 0x119   : > { %v1146_v48 = vmul.f32 0.00390625, %v872_v44  ;;  %v878_v49 = vrot.slane %v877_v45, 1  ;;  %v883_v50 = vrot.slane %v882_v46, 2  ;;  %v888_v51 = vrot.slane %v887_v47, 4 }
 0x11a   : > { %v483_v52 = vpop.xlane.xlu1 %482  ;;  %v480_v53 = vpop.xlane.xlu0 %479 }
 0x11b   : > { %1211 = vst.msk [vmem:[%s1592_s17 + $0x1c] sm:$0x1] %vm1182_vm1, %v1146_v48  ;;  %v879_v54 = vadd.f32 %v878_v49, %v877_v45  ;;  %v884_v55 = vadd.f32 %v883_v50, %v882_v46  ;;  %v889_v56 = vadd.f32 %v888_v51, %v887_v47  ;;  %v894_v57 = vadd.f32 %v483_v52, %v480_v53 }
 0x11d   : > { %v1147_v58 = vmul.f32 0.00390625, %v879_v54  ;;  %v885_v59 = vrot.slane %v884_v55, 1  ;;  %v890_v60 = vrot.slane %v889_v56, 2  ;;  %v895_v61 = vrot.slane %v894_v57, 4 }
 0x11e   : > { %v489_v62 = vpop.xlane.xlu1 %488  ;;  %v486_v63 = vpop.xlane.xlu0 %485 }
 0x11f   : > { %1212 = vst.msk [vmem:[%s1592_s17 + $0x1d] sm:$0x1] %vm1182_vm1, %v1147_v58  ;;  %v886_v0 = vadd.f32 %v885_v59, %v884_v55  ;;  %v891_v1 = vadd.f32 %v890_v60, %v889_v56  ;;  %v896_v2 = vadd.f32 %v895_v61, %v894_v57  ;;  %v901_v3 = vadd.f32 %v489_v62, %v486_v63 }
 0x121   : > { %v1148_v4 = vmul.f32 0.00390625, %v886_v0  ;;  %v892_v5 = vrot.slane %v891_v1, 1  ;;  %v897_v6 = vrot.slane %v896_v2, 2  ;;  %v902_v7 = vrot.slane %v901_v3, 4 }
 0x122   : > { %v495_v8 = vpop.xlane.xlu1 %494  ;;  %v492_v9 = vpop.xlane.xlu0 %491 }
 0x123   : > { %1213 = vst.msk [vmem:[%s1592_s17 + $0x1e] sm:$0x1] %vm1182_vm1, %v1148_v4  ;;  %v893_v10 = vadd.f32 %v892_v5, %v891_v1  ;;  %v898_v11 = vadd.f32 %v897_v6, %v896_v2  ;;  %v903_v12 = vadd.f32 %v902_v7, %v901_v3  ;;  %v908_v13 = vadd.f32 %v495_v8, %v492_v9 }
 0x125   : > { %v1149_v14 = vmul.f32 0.00390625, %v893_v10  ;;  %v899_v15 = vrot.slane %v898_v11, 1  ;;  %v904_v16 = vrot.slane %v903_v12, 2  ;;  %v909_v17 = vrot.slane %v908_v13, 4 }
 0x126   : > { %v501_v18 = vpop.xlane.xlu1 %500  ;;  %v498_v19 = vpop.xlane.xlu0 %497 }
 0x127   : > { %1214 = vst.msk [vmem:[%s1592_s17 + $0x1f] sm:$0x1] %vm1182_vm1, %v1149_v14  ;;  %v900_v20 = vadd.f32 %v899_v15, %v898_v11  ;;  %v905_v21 = vadd.f32 %v904_v16, %v903_v12  ;;  %v910_v22 = vadd.f32 %v909_v17, %v908_v13  ;;  %v915_v23 = vadd.f32 %v501_v18, %v498_v19 }
 0x129   : > { %v1150_v24 = vmul.f32 0.00390625, %v900_v20  ;;  %v906_v25 = vrot.slane %v905_v21, 1  ;;  %v911_v26 = vrot.slane %v910_v22, 2  ;;  %v916_v27 = vrot.slane %v915_v23, 4 }
 0x12a   : > { %v507_v28 = vpop.xlane.xlu1 %506  ;;  %v504_v29 = vpop.xlane.xlu0 %503 }
 0x12b   : > { %1215 = vst.msk [vmem:[%s1592_s17 + $0x20] sm:$0x1] %vm1182_vm1, %v1150_v24  ;;  %v907_v30 = vadd.f32 %v906_v25, %v905_v21  ;;  %v912_v31 = vadd.f32 %v911_v26, %v910_v22  ;;  %v917_v32 = vadd.f32 %v916_v27, %v915_v23  ;;  %v922_v33 = vadd.f32 %v507_v28, %v504_v29 }
 0x12d   : > { %v1151_v34 = vmul.f32 0.00390625, %v907_v30  ;;  %v913_v35 = vrot.slane %v912_v31, 1  ;;  %v918_v36 = vrot.slane %v917_v32, 2  ;;  %v923_v37 = vrot.slane %v922_v33, 4 }
 0x12e   : > { %v513_v38 = vpop.xlane.xlu1 %512  ;;  %v510_v39 = vpop.xlane.xlu0 %509 }
 0x12f   : > { %1216 = vst.msk [vmem:[%s1592_s17 + $0x21] sm:$0x1] %vm1182_vm1, %v1151_v34  ;;  %v914_v40 = vadd.f32 %v913_v35, %v912_v31  ;;  %v919_v41 = vadd.f32 %v918_v36, %v917_v32  ;;  %v924_v42 = vadd.f32 %v923_v37, %v922_v33  ;;  %v929_v43 = vadd.f32 %v513_v38, %v510_v39 }
 0x131   : > { %v1152_v44 = vmul.f32 0.00390625, %v914_v40  ;;  %v920_v45 = vrot.slane %v919_v41, 1  ;;  %v925_v46 = vrot.slane %v924_v42, 2  ;;  %v930_v47 = vrot.slane %v929_v43, 4 }
 0x132   : > { %v519_v48 = vpop.xlane.xlu1 %518  ;;  %v516_v49 = vpop.xlane.xlu0 %515 }
 0x133   : > { %1217 = vst.msk [vmem:[%s1592_s17 + $0x22] sm:$0x1] %vm1182_vm1, %v1152_v44  ;;  %v921_v50 = vadd.f32 %v920_v45, %v919_v41  ;;  %v926_v51 = vadd.f32 %v925_v46, %v924_v42  ;;  %v931_v52 = vadd.f32 %v930_v47, %v929_v43  ;;  %v936_v53 = vadd.f32 %v519_v48, %v516_v49 }
 0x135   : > { %v1153_v54 = vmul.f32 0.00390625, %v921_v50  ;;  %v927_v55 = vrot.slane %v926_v51, 1  ;;  %v932_v56 = vrot.slane %v931_v52, 2  ;;  %v937_v57 = vrot.slane %v936_v53, 4 }
 0x136   : > { %v525_v58 = vpop.xlane.xlu1 %524  ;;  %v522_v59 = vpop.xlane.xlu0 %521 }
 0x137   : > { %1218 = vst.msk [vmem:[%s1592_s17 + $0x23] sm:$0x1] %vm1182_vm1, %v1153_v54  ;;  %v928_v60 = vadd.f32 %v927_v55, %v926_v51  ;;  %v933_v61 = vadd.f32 %v932_v56, %v931_v52  ;;  %v938_v62 = vadd.f32 %v937_v57, %v936_v53  ;;  %v943_v63 = vadd.f32 %v525_v58, %v522_v59 }
 0x139   : > { %v1154_v0 = vmul.f32 0.00390625, %v928_v60  ;;  %v934_v1 = vrot.slane %v933_v61, 1  ;;  %v939_v2 = vrot.slane %v938_v62, 2  ;;  %v944_v3 = vrot.slane %v943_v63, 4 }
 0x13a   : > { %v531_v4 = vpop.xlane.xlu1 %530  ;;  %v528_v5 = vpop.xlane.xlu0 %527 }
 0x13b   : > { %1219 = vst.msk [vmem:[%s1592_s17 + $0x24] sm:$0x1] %vm1182_vm1, %v1154_v0  ;;  %v935_v6 = vadd.f32 %v934_v1, %v933_v61  ;;  %v940_v7 = vadd.f32 %v939_v2, %v938_v62  ;;  %v945_v8 = vadd.f32 %v944_v3, %v943_v63  ;;  %v950_v9 = vadd.f32 %v531_v4, %v528_v5 }
 0x13d   : > { %v1155_v10 = vmul.f32 0.00390625, %v935_v6  ;;  %v941_v11 = vrot.slane %v940_v7, 1  ;;  %v946_v12 = vrot.slane %v945_v8, 2  ;;  %v951_v13 = vrot.slane %v950_v9, 4 }
 0x13e   : > { %v537_v14 = vpop.xlane.xlu1 %536  ;;  %v534_v15 = vpop.xlane.xlu0 %533 }
 0x13f   : > { %1220 = vst.msk [vmem:[%s1592_s17 + $0x25] sm:$0x1] %vm1182_vm1, %v1155_v10  ;;  %v942_v16 = vadd.f32 %v941_v11, %v940_v7  ;;  %v947_v17 = vadd.f32 %v946_v12, %v945_v8  ;;  %v952_v18 = vadd.f32 %v951_v13, %v950_v9  ;;  %v957_v19 = vadd.f32 %v537_v14, %v534_v15 }
 0x141   : > { %v1156_v20 = vmul.f32 0.00390625, %v942_v16  ;;  %v948_v21 = vrot.slane %v947_v17, 1  ;;  %v953_v22 = vrot.slane %v952_v18, 2  ;;  %v958_v23 = vrot.slane %v957_v19, 4 }
 0x142   : > { %v543_v24 = vpop.xlane.xlu1 %542  ;;  %v540_v25 = vpop.xlane.xlu0 %539 }
 0x143   : > { %1221 = vst.msk [vmem:[%s1592_s17 + $0x26] sm:$0x1] %vm1182_vm1, %v1156_v20  ;;  %v949_v26 = vadd.f32 %v948_v21, %v947_v17  ;;  %v954_v27 = vadd.f32 %v953_v22, %v952_v18  ;;  %v959_v28 = vadd.f32 %v958_v23, %v957_v19  ;;  %v964_v29 = vadd.f32 %v543_v24, %v540_v25 }
 0x145   : > { %v1157_v30 = vmul.f32 0.00390625, %v949_v26  ;;  %v955_v31 = vrot.slane %v954_v27, 1  ;;  %v960_v32 = vrot.slane %v959_v28, 2  ;;  %v965_v33 = vrot.slane %v964_v29, 4 }
 0x146   : > { %v549_v34 = vpop.xlane.xlu1 %548  ;;  %v546_v35 = vpop.xlane.xlu0 %545 }
 0x147   : > { %1222 = vst.msk [vmem:[%s1592_s17 + $0x27] sm:$0x1] %vm1182_vm1, %v1157_v30  ;;  %v956_v36 = vadd.f32 %v955_v31, %v954_v27  ;;  %v961_v37 = vadd.f32 %v960_v32, %v959_v28  ;;  %v966_v38 = vadd.f32 %v965_v33, %v964_v29  ;;  %v971_v39 = vadd.f32 %v549_v34, %v546_v35 }
 0x149   : > { %v1158_v40 = vmul.f32 0.00390625, %v956_v36  ;;  %v962_v41 = vrot.slane %v961_v37, 1  ;;  %v967_v42 = vrot.slane %v966_v38, 2  ;;  %v972_v43 = vrot.slane %v971_v39, 4 }
 0x14a   : > { %v555_v44 = vpop.xlane.xlu1 %554  ;;  %v552_v45 = vpop.xlane.xlu0 %551 }
 0x14b   : > { %1223 = vst.msk [vmem:[%s1592_s17 + $0x28] sm:$0x1] %vm1182_vm1, %v1158_v40  ;;  %v963_v46 = vadd.f32 %v962_v41, %v961_v37  ;;  %v968_v47 = vadd.f32 %v967_v42, %v966_v38  ;;  %v973_v48 = vadd.f32 %v972_v43, %v971_v39  ;;  %v978_v49 = vadd.f32 %v555_v44, %v552_v45 }
 0x14d   : > { %v1159_v50 = vmul.f32 0.00390625, %v963_v46  ;;  %v969_v51 = vrot.slane %v968_v47, 1  ;;  %v974_v52 = vrot.slane %v973_v48, 2  ;;  %v979_v53 = vrot.slane %v978_v49, 4 }
 0x14e   : > { %v561_v54 = vpop.xlane.xlu1 %560  ;;  %v558_v55 = vpop.xlane.xlu0 %557 }
 0x14f   : > { %1224 = vst.msk [vmem:[%s1592_s17 + $0x29] sm:$0x1] %vm1182_vm1, %v1159_v50  ;;  %v970_v56 = vadd.f32 %v969_v51, %v968_v47  ;;  %v975_v57 = vadd.f32 %v974_v52, %v973_v48  ;;  %v980_v58 = vadd.f32 %v979_v53, %v978_v49  ;;  %v985_v59 = vadd.f32 %v561_v54, %v558_v55 }
 0x151   : > { %v1160_v60 = vmul.f32 0.00390625, %v970_v56  ;;  %v976_v61 = vrot.slane %v975_v57, 1  ;;  %v981_v62 = vrot.slane %v980_v58, 2  ;;  %v986_v63 = vrot.slane %v985_v59, 4 }
 0x152   : > { %v567_v0 = vpop.xlane.xlu1 %566  ;;  %v564_v1 = vpop.xlane.xlu0 %563 }
 0x153   : > { %1225 = vst.msk [vmem:[%s1592_s17 + $0x2a] sm:$0x1] %vm1182_vm1, %v1160_v60  ;;  %v977_v2 = vadd.f32 %v976_v61, %v975_v57  ;;  %v982_v3 = vadd.f32 %v981_v62, %v980_v58  ;;  %v987_v4 = vadd.f32 %v986_v63, %v985_v59  ;;  %v992_v5 = vadd.f32 %v567_v0, %v564_v1 }
 0x155   : > { %v1161_v6 = vmul.f32 0.00390625, %v977_v2  ;;  %v983_v7 = vrot.slane %v982_v3, 1  ;;  %v988_v8 = vrot.slane %v987_v4, 2  ;;  %v993_v9 = vrot.slane %v992_v5, 4 }
 0x156   : > { %v573_v10 = vpop.xlane.xlu1 %572  ;;  %v570_v11 = vpop.xlane.xlu0 %569 }
 0x157   : > { %1226 = vst.msk [vmem:[%s1592_s17 + $0x2b] sm:$0x1] %vm1182_vm1, %v1161_v6  ;;  %v984_v12 = vadd.f32 %v983_v7, %v982_v3  ;;  %v989_v13 = vadd.f32 %v988_v8, %v987_v4  ;;  %v994_v14 = vadd.f32 %v993_v9, %v992_v5  ;;  %v999_v15 = vadd.f32 %v573_v10, %v570_v11 }
 0x159   : > { %v1162_v16 = vmul.f32 0.00390625, %v984_v12  ;;  %v990_v17 = vrot.slane %v989_v13, 1  ;;  %v995_v18 = vrot.slane %v994_v14, 2  ;;  %v1000_v19 = vrot.slane %v999_v15, 4 }
 0x15a   : > { %v579_v20 = vpop.xlane.xlu1 %578  ;;  %v576_v21 = vpop.xlane.xlu0 %575 }
 0x15b   : > { %1227 = vst.msk [vmem:[%s1592_s17 + $0x2c] sm:$0x1] %vm1182_vm1, %v1162_v16  ;;  %v991_v22 = vadd.f32 %v990_v17, %v989_v13  ;;  %v996_v23 = vadd.f32 %v995_v18, %v994_v14  ;;  %v1001_v24 = vadd.f32 %v1000_v19, %v999_v15  ;;  %v1006_v25 = vadd.f32 %v579_v20, %v576_v21 }
 0x15d   : > { %v1163_v26 = vmul.f32 0.00390625, %v991_v22  ;;  %v997_v27 = vrot.slane %v996_v23, 1  ;;  %v1002_v28 = vrot.slane %v1001_v24, 2  ;;  %v1007_v29 = vrot.slane %v1006_v25, 4 }
 0x15e   : > { %v585_v30 = vpop.xlane.xlu1 %584  ;;  %v582_v31 = vpop.xlane.xlu0 %581 }
 0x15f   : > { %1228 = vst.msk [vmem:[%s1592_s17 + $0x2d] sm:$0x1] %vm1182_vm1, %v1163_v26  ;;  %v998_v32 = vadd.f32 %v997_v27, %v996_v23  ;;  %v1003_v33 = vadd.f32 %v1002_v28, %v1001_v24  ;;  %v1008_v34 = vadd.f32 %v1007_v29, %v1006_v25  ;;  %v1013_v35 = vadd.f32 %v585_v30, %v582_v31 }
 0x161   : > { %v1164_v36 = vmul.f32 0.00390625, %v998_v32  ;;  %v1004_v37 = vrot.slane %v1003_v33, 1  ;;  %v1009_v38 = vrot.slane %v1008_v34, 2  ;;  %v1014_v39 = vrot.slane %v1013_v35, 4 }
 0x162   : > { %v591_v40 = vpop.xlane.xlu1 %590  ;;  %v588_v41 = vpop.xlane.xlu0 %587 }
 0x163   : > { %1229 = vst.msk [vmem:[%s1592_s17 + $0x2e] sm:$0x1] %vm1182_vm1, %v1164_v36  ;;  %v1005_v42 = vadd.f32 %v1004_v37, %v1003_v33  ;;  %v1010_v43 = vadd.f32 %v1009_v38, %v1008_v34  ;;  %v1015_v44 = vadd.f32 %v1014_v39, %v1013_v35  ;;  %v1020_v45 = vadd.f32 %v591_v40, %v588_v41 }
 0x165   : > { %v1165_v46 = vmul.f32 0.00390625, %v1005_v42  ;;  %v1011_v47 = vrot.slane %v1010_v43, 1  ;;  %v1016_v48 = vrot.slane %v1015_v44, 2  ;;  %v1021_v49 = vrot.slane %v1020_v45, 4 }
 0x166   : > { %v597_v50 = vpop.xlane.xlu1 %596  ;;  %v594_v51 = vpop.xlane.xlu0 %593 }
 0x167   : > { %1230 = vst.msk [vmem:[%s1592_s17 + $0x2f] sm:$0x1] %vm1182_vm1, %v1165_v46  ;;  %v1012_v52 = vadd.f32 %v1011_v47, %v1010_v43  ;;  %v1017_v53 = vadd.f32 %v1016_v48, %v1015_v44  ;;  %v1022_v54 = vadd.f32 %v1021_v49, %v1020_v45  ;;  %v1027_v55 = vadd.f32 %v597_v50, %v594_v51 }
 0x169   : > { %v1166_v56 = vmul.f32 0.00390625, %v1012_v52  ;;  %v1018_v57 = vrot.slane %v1017_v53, 1  ;;  %v1023_v58 = vrot.slane %v1022_v54, 2  ;;  %v1028_v59 = vrot.slane %v1027_v55, 4 }
 0x16a   : > { %v603_v60 = vpop.xlane.xlu1 %602  ;;  %v600_v61 = vpop.xlane.xlu0 %599 }
 0x16b   : > { %1231 = vst.msk [vmem:[%s1592_s17 + $0x30] sm:$0x1] %vm1182_vm1, %v1166_v56  ;;  %v1019_v62 = vadd.f32 %v1018_v57, %v1017_v53  ;;  %v1024_v63 = vadd.f32 %v1023_v58, %v1022_v54  ;;  %v1029_v0 = vadd.f32 %v1028_v59, %v1027_v55  ;;  %v1034_v1 = vadd.f32 %v603_v60, %v600_v61 }
 0x16d   : > { %v1167_v2 = vmul.f32 0.00390625, %v1019_v62  ;;  %v1025_v3 = vrot.slane %v1024_v63, 1  ;;  %v1030_v4 = vrot.slane %v1029_v0, 2  ;;  %v1035_v5 = vrot.slane %v1034_v1, 4 }
 0x16e   : > { %v609_v6 = vpop.xlane.xlu1 %608  ;;  %v606_v7 = vpop.xlane.xlu0 %605 }
 0x16f   : > { %1232 = vst.msk [vmem:[%s1592_s17 + $0x31] sm:$0x1] %vm1182_vm1, %v1167_v2  ;;  %v1026_v8 = vadd.f32 %v1025_v3, %v1024_v63  ;;  %v1031_v9 = vadd.f32 %v1030_v4, %v1029_v0  ;;  %v1036_v10 = vadd.f32 %v1035_v5, %v1034_v1  ;;  %v1041_v11 = vadd.f32 %v609_v6, %v606_v7 }
 0x171   : > { %v1168_v12 = vmul.f32 0.00390625, %v1026_v8  ;;  %v1032_v13 = vrot.slane %v1031_v9, 1  ;;  %v1037_v14 = vrot.slane %v1036_v10, 2  ;;  %v1042_v15 = vrot.slane %v1041_v11, 4 }
 0x172   : > { %v615_v16 = vpop.xlane.xlu1 %614  ;;  %v612_v17 = vpop.xlane.xlu0 %611 }
 0x173   : > { %1233 = vst.msk [vmem:[%s1592_s17 + $0x32] sm:$0x1] %vm1182_vm1, %v1168_v12  ;;  %v1033_v18 = vadd.f32 %v1032_v13, %v1031_v9  ;;  %v1038_v19 = vadd.f32 %v1037_v14, %v1036_v10  ;;  %v1043_v20 = vadd.f32 %v1042_v15, %v1041_v11  ;;  %v1048_v21 = vadd.f32 %v615_v16, %v612_v17 }
 0x175   : > { %v1169_v22 = vmul.f32 0.00390625, %v1033_v18  ;;  %v1039_v23 = vrot.slane %v1038_v19, 1  ;;  %v1044_v24 = vrot.slane %v1043_v20, 2  ;;  %v1049_v25 = vrot.slane %v1048_v21, 4 }
 0x176   : > { %v621_v26 = vpop.xlane.xlu1 %620  ;;  %v618_v27 = vpop.xlane.xlu0 %617 }
 0x177   : > { %1234 = vst.msk [vmem:[%s1592_s17 + $0x33] sm:$0x1] %vm1182_vm1, %v1169_v22  ;;  %v1040_v28 = vadd.f32 %v1039_v23, %v1038_v19  ;;  %v1045_v29 = vadd.f32 %v1044_v24, %v1043_v20  ;;  %v1050_v30 = vadd.f32 %v1049_v25, %v1048_v21  ;;  %v1055_v31 = vadd.f32 %v621_v26, %v618_v27 }
 0x179   : > { %v1170_v32 = vmul.f32 0.00390625, %v1040_v28  ;;  %v1046_v33 = vrot.slane %v1045_v29, 1  ;;  %v1051_v34 = vrot.slane %v1050_v30, 2  ;;  %v1056_v35 = vrot.slane %v1055_v31, 4 }
 0x17a   : > { %v627_v36 = vpop.xlane.xlu1 %626  ;;  %v624_v37 = vpop.xlane.xlu0 %623 }
 0x17b   : > { %1235 = vst.msk [vmem:[%s1592_s17 + $0x34] sm:$0x1] %vm1182_vm1, %v1170_v32  ;;  %v1047_v38 = vadd.f32 %v1046_v33, %v1045_v29  ;;  %v1052_v39 = vadd.f32 %v1051_v34, %v1050_v30  ;;  %v1057_v40 = vadd.f32 %v1056_v35, %v1055_v31  ;;  %v1062_v41 = vadd.f32 %v627_v36, %v624_v37 }
 0x17d   : > { %v1171_v42 = vmul.f32 0.00390625, %v1047_v38  ;;  %v1053_v43 = vrot.slane %v1052_v39, 1  ;;  %v1058_v44 = vrot.slane %v1057_v40, 2  ;;  %v1063_v45 = vrot.slane %v1062_v41, 4 }
 0x17e   : > { %v633_v46 = vpop.xlane.xlu1 %632  ;;  %v630_v47 = vpop.xlane.xlu0 %629 }
 0x17f   : > { %1236 = vst.msk [vmem:[%s1592_s17 + $0x35] sm:$0x1] %vm1182_vm1, %v1171_v42  ;;  %v1054_v48 = vadd.f32 %v1053_v43, %v1052_v39  ;;  %v1059_v49 = vadd.f32 %v1058_v44, %v1057_v40  ;;  %v1064_v50 = vadd.f32 %v1063_v45, %v1062_v41  ;;  %v1069_v51 = vadd.f32 %v633_v46, %v630_v47 }
 0x181   : > { %v1172_v52 = vmul.f32 0.00390625, %v1054_v48  ;;  %v1060_v53 = vrot.slane %v1059_v49, 1  ;;  %v1065_v54 = vrot.slane %v1064_v50, 2  ;;  %v1070_v55 = vrot.slane %v1069_v51, 4 }
 0x182   : > { %v639_v56 = vpop.xlane.xlu1 %638  ;;  %v636_v57 = vpop.xlane.xlu0 %635 }
 0x183   : > { %1237 = vst.msk [vmem:[%s1592_s17 + $0x36] sm:$0x1] %vm1182_vm1, %v1172_v52  ;;  %v1061_v58 = vadd.f32 %v1060_v53, %v1059_v49  ;;  %v1066_v59 = vadd.f32 %v1065_v54, %v1064_v50  ;;  %v1071_v60 = vadd.f32 %v1070_v55, %v1069_v51  ;;  %v1076_v61 = vadd.f32 %v639_v56, %v636_v57 }
 0x185   : > { %v1173_v62 = vmul.f32 0.00390625, %v1061_v58  ;;  %v1067_v63 = vrot.slane %v1066_v59, 1  ;;  %v1072_v0 = vrot.slane %v1071_v60, 2  ;;  %v1077_v1 = vrot.slane %v1076_v61, 4 }
 0x186   : > { %v645_v2 = vpop.xlane.xlu1 %644  ;;  %v642_v3 = vpop.xlane.xlu0 %641 }
 0x187   : > { %1238 = vst.msk [vmem:[%s1592_s17 + $0x37] sm:$0x1] %vm1182_vm1, %v1173_v62  ;;  %v1068_v4 = vadd.f32 %v1067_v63, %v1066_v59  ;;  %v1073_v5 = vadd.f32 %v1072_v0, %v1071_v60  ;;  %v1078_v6 = vadd.f32 %v1077_v1, %v1076_v61  ;;  %v1083_v7 = vadd.f32 %v645_v2, %v642_v3 }
 0x189   : > { %v1174_v8 = vmul.f32 0.00390625, %v1068_v4  ;;  %v1074_v9 = vrot.slane %v1073_v5, 1  ;;  %v1079_v10 = vrot.slane %v1078_v6, 2  ;;  %v1084_v11 = vrot.slane %v1083_v7, 4 }
 0x18a   : > { %v651_v12 = vpop.xlane.xlu1 %650  ;;  %v648_v13 = vpop.xlane.xlu0 %647 }
 0x18b   : > { %1239 = vst.msk [vmem:[%s1592_s17 + $0x38] sm:$0x1] %vm1182_vm1, %v1174_v8  ;;  %v1075_v14 = vadd.f32 %v1074_v9, %v1073_v5  ;;  %v1080_v15 = vadd.f32 %v1079_v10, %v1078_v6  ;;  %v1085_v16 = vadd.f32 %v1084_v11, %v1083_v7  ;;  %v1090_v17 = vadd.f32 %v651_v12, %v648_v13 }
 0x18d   : > { %v1175_v18 = vmul.f32 0.00390625, %v1075_v14  ;;  %v1081_v19 = vrot.slane %v1080_v15, 1  ;;  %v1086_v20 = vrot.slane %v1085_v16, 2  ;;  %v1091_v21 = vrot.slane %v1090_v17, 4 }
 0x18e   : > { %v657_v22 = vpop.xlane.xlu1 %656  ;;  %v654_v23 = vpop.xlane.xlu0 %653 }
 0x18f   : > { %1240 = vst.msk [vmem:[%s1592_s17 + $0x39] sm:$0x1] %vm1182_vm1, %v1175_v18  ;;  %v1082_v24 = vadd.f32 %v1081_v19, %v1080_v15  ;;  %v1087_v25 = vadd.f32 %v1086_v20, %v1085_v16  ;;  %v1092_v26 = vadd.f32 %v1091_v21, %v1090_v17  ;;  %v1097_v27 = vadd.f32 %v657_v22, %v654_v23 }
 0x191   : > { %v1176_v28 = vmul.f32 0.00390625, %v1082_v24  ;;  %v1088_v29 = vrot.slane %v1087_v25, 1  ;;  %v1093_v30 = vrot.slane %v1092_v26, 2  ;;  %v1098_v31 = vrot.slane %v1097_v27, 4 }
 0x192   : > { %v663_v32 = vpop.xlane.xlu1 %662  ;;  %v660_v33 = vpop.xlane.xlu0 %659 }
 0x193   : > { %1241 = vst.msk [vmem:[%s1592_s17 + $0x3a] sm:$0x1] %vm1182_vm1, %v1176_v28  ;;  %v1089_v34 = vadd.f32 %v1088_v29, %v1087_v25  ;;  %v1094_v35 = vadd.f32 %v1093_v30, %v1092_v26  ;;  %v1099_v36 = vadd.f32 %v1098_v31, %v1097_v27  ;;  %v1104_v37 = vadd.f32 %v663_v32, %v660_v33 }
 0x195   : > { %v1177_v38 = vmul.f32 0.00390625, %v1089_v34  ;;  %v1095_v39 = vrot.slane %v1094_v35, 1  ;;  %v1100_v40 = vrot.slane %v1099_v36, 2  ;;  %v1105_v41 = vrot.slane %v1104_v37, 4 }
 0x196   : > { %v669_v42 = vpop.xlane.xlu1 %668  ;;  %v666_v43 = vpop.xlane.xlu0 %665 }
 0x197   : > { %1242 = vst.msk [vmem:[%s1592_s17 + $0x3b] sm:$0x1] %vm1182_vm1, %v1177_v38  ;;  %v1096_v44 = vadd.f32 %v1095_v39, %v1094_v35  ;;  %v1101_v45 = vadd.f32 %v1100_v40, %v1099_v36  ;;  %v1106_v46 = vadd.f32 %v1105_v41, %v1104_v37  ;;  %v1111_v47 = vadd.f32 %v669_v42, %v666_v43 }
 0x199   : > { %v1178_v48 = vmul.f32 0.00390625, %v1096_v44  ;;  %v1102_v49 = vrot.slane %v1101_v45, 1  ;;  %v1107_v50 = vrot.slane %v1106_v46, 2  ;;  %v1112_v51 = vrot.slane %v1111_v47, 4 }
 0x19b   : > { %1243 = vst.msk [vmem:[%s1592_s17 + $0x3c] sm:$0x1] %vm1182_vm1, %v1178_v48  ;;  %v1103_v52 = vadd.f32 %v1102_v49, %v1101_v45  ;;  %v1108_v53 = vadd.f32 %v1107_v50, %v1106_v46  ;;  %v1113_v54 = vadd.f32 %v1112_v51, %v1111_v47 }
 0x19d   : > { %v1179_v55 = vmul.f32 0.00390625, %v1103_v52  ;;  %v1109_v56 = vrot.slane %v1108_v53, 1  ;;  %v1114_v57 = vrot.slane %v1113_v54, 2 }
 0x19f   : > { %1244 = vst.msk [vmem:[%s1592_s17 + $0x3d] sm:$0x1] %vm1182_vm1, %v1179_v55  ;;  %v1110_v58 = vadd.f32 %v1109_v56, %v1108_v53  ;;  %v1115_v59 = vadd.f32 %v1114_v57, %v1113_v54 }
 0x1a1   : > { %v1180_v60 = vmul.f32 0.00390625, %v1110_v58  ;;  %v1116_v61 = vrot.slane %v1115_v59, 1 }
 0x1a3   : > { %1245 = vst.msk [vmem:[%s1592_s17 + $0x3e] sm:$0x1] %vm1182_vm1, %v1180_v60  ;;  %v1117_v62 = vadd.f32 %v1116_v61, %v1115_v59 }
 0x1a5   : > { %v1181_v63 = vmul.f32 0.00390625, %v1117_v62 }
 0x1a7   : > { %1246 = vst.msk [vmem:[%s1592_s17 + $0x3f] sm:$0x1] %vm1182_vm1, %v1181_v63 }
 0x1a8 PF: > { %s11_s8 = sadd.s32 1, %s1388_s8   ;;  %s1827_s6 = smov %s1384_s7 }
 0x1a9   : > { %p8_p5 = scmp.ge.s32.totalorder %s11_s8, 4   ;;  %s1828_s7 = smov %s1830_s9 }
 0x1ab   :  { %10 = sbr.rel (!%p8_p5) target bundleno = 2 (0x2), region = 54 }

// kernel: squeeze_and_excite.5
= control target key start
LH: loop header
LB: loop body
LE: loop exit
PB: predicated region body
PF: predicated region fallthrough
CT: control target
= control target key end

     0   :  { %s1502_s9 = smov 0   ;;  %s1504_s10 = smov 0   ;;  %s1996_s0 = inlined_call_operand.vmem [shape: f32[2,64,16,16], index: 0, kind: input, shape index: {}]   ;;  %s1997_s1 = inlined_call_operand.vmem [shape: f32[2,64,1,1], index: 1, kind: input, shape index: {}]   ;;  %s1998_s2 = inlined_call_operand.vmem [shape: f32[2,64,16,16], index: 2, kind: output, shape index: {}]  }
   0x1   :  { %s1506_s11 = smov 0  }
   0x2 LB: > { %s24_s12 = sadd.s32 1, %s1480_s10  ;;  %p1361_p0 = scmp.ge.s32.totalorder %s1484_s11, 1  ;;  %s1484_s11 = sphi %s1506_s11, %s12_s11   ;;  %s1480_s10 = sphi %s1504_s10, %s2000_s10   ;;  %s1476_s9 = sphi %s1502_s9, %s1999_s9  }
   0x3   : > { %p26_p1 = scmp.ge.s32.totalorder %s24_s12, 2  ;;  %p150_p2 = scmp.lt.s32.totalorder %s1484_s11, 3 }
   0x5   : > { %s2002_s12 = smov (%p26_p1, %s24_s12), 0  ;;  %p151_p3 = pnand %p1361_p0, %p150_p2 }
   0x6   : > { %p191_p4 = scmp.lt.s32.totalorder (!%p151_p3), %s1476_s9, 1 }
   0x7   : > { %154 = sbr.rel (%p151_p3) target bundleno = 268 (0x10c), region = 28 }
   0xc   : > { %v1486_v0 = vmov 0   ;;  %s2004_s9 = smov (!%p191_p4, %s1476_s9), 1  ;;  %vm1117_vm0 = vcmask 130048  }
   0xd   : > { %1461 = vset.pattern.permute.xlu1 %v1486_v0  ;;  %1460 = vset.pattern.permute.xlu0 %v1486_v0  ;;  %s1364_s13 = sshll.u32 %s2004_s9, 6  ;;  %s1433_s17 = sshll.u32 %s2004_s9, 10 }
   0xe   : > { %s1526_s16 = scalar_lea.vmem %s1997_s1, %s1364_s13  ;;  %s1592_s20 = scalar_lea.vmem %s1996_s0, %s1433_s17 }
   0xf   : > { %v1369_v1 = vld [vmem:[%s1526_s16 + $0x2] ss:$0 sm:$0xff]  ;;  %v1367_v2 = vld [vmem:[%s1526_s16] ss:$0 sm:$0xff]  ;;  %v1370_v3 = vld [vmem:[%s1526_s16 + $0x3] ss:$0 sm:$0xff]  ;;  %s1605_s23 = scalar_lea.vmem %s1998_s2, %s1433_s17 }
  0x10   : > { %742 = vperm.xlu1 %1461, %v1369_v1   ;;  %734 = vperm.xlu0 %1460, %v1367_v2   ;;  %v1368_v4 = vld [vmem:[%s1526_s16 + $0x1] ss:$0 sm:$0xff]  ;;  %v1372_v5 = vld [vmem:[%s1526_s16 + $0x5] ss:$0 sm:$0xff]  ;;  %v1371_v6 = vld [vmem:[%s1526_s16 + $0x4] ss:$0 sm:$0xff] }
  0x11   : > { %v1374_v7 = vld [vmem:[%s1526_s16 + $0x7] ss:$0 sm:$0xff]  ;;  %v1373_v8 = vld [vmem:[%s1526_s16 + $0x6] ss:$0 sm:$0xff]  ;;  %v1376_v9 = vld [vmem:[%s1526_s16 + $0x9] ss:$0 sm:$0xff] }
  0x12   : > { %v1375_v10 = vld [vmem:[%s1526_s16 + $0x8] ss:$0 sm:$0xff]  ;;  %v1378_v11 = vld [vmem:[%s1526_s16 + $0xb] ss:$0 sm:$0xff]  ;;  %v1377_v12 = vld [vmem:[%s1526_s16 + $0xa] ss:$0 sm:$0xff] }
  0x13   : > { %v1380_v13 = vld [vmem:[%s1526_s16 + $0xd] ss:$0 sm:$0xff]  ;;  %v1379_v14 = vld [vmem:[%s1526_s16 + $0xc] ss:$0 sm:$0xff]  ;;  %v1382_v15 = vld [vmem:[%s1526_s16 + $0xf] ss:$0 sm:$0xff] }
  0x14   : > { %746 = vperm.xlu1 %1461, %v1370_v3   ;;  %738 = vperm.xlu0 %1460, %v1368_v4   ;;  %v1381_v16 = vld [vmem:[%s1526_s16 + $0xe] ss:$0 sm:$0xff]  ;;  %v1384_v17 = vld [vmem:[%s1526_s16 + $0x11] ss:$0 sm:$0xff]  ;;  %v1383_v18 = vld [vmem:[%s1526_s16 + $0x10] ss:$0 sm:$0xff] }
  0x15   : > { %v1386_v19 = vld [vmem:[%s1526_s16 + $0x13] ss:$0 sm:$0xff]  ;;  %v1385_v20 = vld [vmem:[%s1526_s16 + $0x12] ss:$0 sm:$0xff]  ;;  %v1388_v21 = vld [vmem:[%s1526_s16 + $0x15] ss:$0 sm:$0xff] }
  0x16   : > { %v1387_v22 = vld [vmem:[%s1526_s16 + $0x14] ss:$0 sm:$0xff]  ;;  %v1390_v23 = vld [vmem:[%s1526_s16 + $0x17] ss:$0 sm:$0xff]  ;;  %v1389_v24 = vld [vmem:[%s1526_s16 + $0x16] ss:$0 sm:$0xff] }
  0x17   : > { %v1392_v25 = vld [vmem:[%s1526_s16 + $0x19] ss:$0 sm:$0xff]  ;;  %v1391_v26 = vld [vmem:[%s1526_s16 + $0x18] ss:$0 sm:$0xff]  ;;  %v1394_v27 = vld [vmem:[%s1526_s16 + $0x1b] ss:$0 sm:$0xff] }
  0x18   : > { %754 = vperm.xlu1 %1461, %v1372_v5   ;;  %750 = vperm.xlu0 %1460, %v1371_v6   ;;  %v1393_v28 = vld [vmem:[%s1526_s16 + $0x1a] ss:$0 sm:$0xff]  ;;  %v1396_v29 = vld [vmem:[%s1526_s16 + $0x1d] ss:$0 sm:$0xff]  ;;  %v1395_v30 = vld [vmem:[%s1526_s16 + $0x1c] ss:$0 sm:$0xff] }
  0x19   : > { %v1398_v31 = vld [vmem:[%s1526_s16 + $0x1f] ss:$0 sm:$0xff]  ;;  %v1397_v32 = vld [vmem:[%s1526_s16 + $0x1e] ss:$0 sm:$0xff]  ;;  %v1400_v33 = vld [vmem:[%s1526_s16 + $0x21] ss:$0 sm:$0xff] }
  0x1a   : > { %v1399_v34 = vld [vmem:[%s1526_s16 + $0x20] ss:$0 sm:$0xff]  ;;  %v1402_v35 = vld [vmem:[%s1526_s16 + $0x23] ss:$0 sm:$0xff]  ;;  %v1401_v36 = vld [vmem:[%s1526_s16 + $0x22] ss:$0 sm:$0xff] }
  0x1b   : > { %v1404_v37 = vld [vmem:[%s1526_s16 + $0x25] ss:$0 sm:$0xff]  ;;  %v1403_v38 = vld [vmem:[%s1526_s16 + $0x24] ss:$0 sm:$0xff]  ;;  %v1406_v39 = vld [vmem:[%s1526_s16 + $0x27] ss:$0 sm:$0xff] }
  0x1c   : > { %762 = vperm.xlu1 %1461, %v1374_v7   ;;  %758 = vperm.xlu0 %1460, %v1373_v8   ;;  %v1405_v40 = vld [vmem:[%s1526_s16 + $0x26] ss:$0 sm:$0xff]  ;;  %v1408_v41 = vld [vmem:[%s1526_s16 + $0x29] ss:$0 sm:$0xff]  ;;  %v1407_v42 = vld [vmem:[%s1526_s16 + $0x28] ss:$0 sm:$0xff] }
  0x1d   : > { %v1410_v43 = vld [vmem:[%s1526_s16 + $0x2b] ss:$0 sm:$0xff]  ;;  %v1409_v44 = vld [vmem:[%s1526_s16 + $0x2a] ss:$0 sm:$0xff]  ;;  %v1412_v45 = vld [vmem:[%s1526_s16 + $0x2d] ss:$0 sm:$0xff] }
  0x1e   : > { %v1411_v46 = vld [vmem:[%s1526_s16 + $0x2c] ss:$0 sm:$0xff]  ;;  %v1414_v47 = vld [vmem:[%s1526_s16 + $0x2f] ss:$0 sm:$0xff]  ;;  %v1413_v48 = vld [vmem:[%s1526_s16 + $0x2e] ss:$0 sm:$0xff] }
  0x1f   : > { %v1416_v49 = vld [vmem:[%s1526_s16 + $0x31] ss:$0 sm:$0xff]  ;;  %v1415_v50 = vld [vmem:[%s1526_s16 + $0x30] ss:$0 sm:$0xff]  ;;  %v1418_v51 = vld [vmem:[%s1526_s16 + $0x33] ss:$0 sm:$0xff] }
  0x20   : > { %770 = vperm.xlu1 %1461, %v1376_v9   ;;  %766 = vperm.xlu0 %1460, %v1375_v10   ;;  %v1417_v52 = vld [vmem:[%s1526_s16 + $0x32] ss:$0 sm:$0xff]  ;;  %v1420_v53 = vld [vmem:[%s1526_s16 + $0x35] ss:$0 sm:$0xff]  ;;  %v1419_v54 = vld [vmem:[%s1526_s16 + $0x34] ss:$0 sm:$0xff] }
  0x21   : > { %v1422_v55 = vld [vmem:[%s1526_s16 + $0x37] ss:$0 sm:$0xff]  ;;  %v1421_v56 = vld [vmem:[%s1526_s16 + $0x36] ss:$0 sm:$0xff]  ;;  %v1424_v57 = vld [vmem:[%s1526_s16 + $0x39] ss:$0 sm:$0xff] }
  0x22   : > { %v1423_v58 = vld [vmem:[%s1526_s16 + $0x38] ss:$0 sm:$0xff]  ;;  %v1426_v59 = vld [vmem:[%s1526_s16 + $0x3b] ss:$0 sm:$0xff]  ;;  %v1425_v60 = vld [vmem:[%s1526_s16 + $0x3a] ss:$0 sm:$0xff] }
  0x23   : > { %v1428_v61 = vld [vmem:[%s1526_s16 + $0x3d] ss:$0 sm:$0xff]  ;;  %v1427_v62 = vld [vmem:[%s1526_s16 + $0x3c] ss:$0 sm:$0xff]  ;;  %v225_v63 = vld [vmem:[%s1592_s20 + $0x20] sm:$0xff] }
  0x24   : > { %778 = vperm.xlu1 %1461, %v1378_v11   ;;  %774 = vperm.xlu0 %1460, %v1377_v12   ;;  %v226_v0 = vld [vmem:[%s1592_s20 + $0x28] sm:$0xff]  ;;  %v221_v1 = vld [vmem:[%s1592_s20] sm:$0xff]  ;;  %v1430_v3 = vld [vmem:[%s1526_s16 + $0x3f] ss:$0 sm:$0xff] }
  0x25   : > { %v222_v2 = vld [vmem:[%s1592_s20 + $0x8] sm:$0xff]  ;;  %v1429_v4 = vld [vmem:[%s1526_s16 + $0x3e] ss:$0 sm:$0xff]  ;;  %v227_v11 = vld [vmem:[%s1592_s20 + $0x30] sm:$0xff] }
  0x26   : > { %v228_v12 = vld [vmem:[%s1592_s20 + $0x38] sm:$0xff] }
  0x28   : > { %786 = vperm.xlu1 %1461, %v1380_v13   ;;  %782 = vperm.xlu0 %1460, %v1379_v14   ;;  %v223_v13 = vld [vmem:[%s1592_s20 + $0x10] sm:$0xff]  ;;  %v224_v14 = vld [vmem:[%s1592_s20 + $0x18] sm:$0xff] }
  0x2c   : > { %794 = vperm.xlu1 %1461, %v1382_v15   ;;  %790 = vperm.xlu0 %1460, %v1381_v16  }
  0x30   : > { %802 = vperm.xlu1 %1461, %v1384_v17   ;;  %798 = vperm.xlu0 %1460, %v1383_v18  }
  0x34   : > { %810 = vperm.xlu1 %1461, %v1386_v19   ;;  %806 = vperm.xlu0 %1460, %v1385_v20  }
  0x38   : > { %818 = vperm.xlu1 %1461, %v1388_v21   ;;  %814 = vperm.xlu0 %1460, %v1387_v22   ;;  %v231_v21 = vld [vmem:[%s1592_s20 + $0x50] sm:$0xff]  ;;  %v232_v22 = vld [vmem:[%s1592_s20 + $0x58] sm:$0xff] }
  0x3c   : > { %826 = vperm.xlu1 %1461, %v1390_v23   ;;  %822 = vperm.xlu0 %1460, %v1389_v24   ;;  %v229_v23 = vld [vmem:[%s1592_s20 + $0x40] sm:$0xff]  ;;  %v230_v24 = vld [vmem:[%s1592_s20 + $0x48] sm:$0xff] }
  0x40   : > { %834 = vperm.xlu1 %1461, %v1392_v25   ;;  %830 = vperm.xlu0 %1460, %v1391_v26  }
  0x44   : > { %842 = vperm.xlu1 %1461, %v1394_v27   ;;  %838 = vperm.xlu0 %1460, %v1393_v28  }
  0x48   : > { %850 = vperm.xlu1 %1461, %v1396_v29   ;;  %846 = vperm.xlu0 %1460, %v1395_v30  }
  0x4c   : > { %858 = vperm.xlu1 %1461, %v1398_v31   ;;  %854 = vperm.xlu0 %1460, %v1397_v32   ;;  %v235_v31 = vld [vmem:[%s1592_s20 + $0x70] sm:$0xff]  ;;  %v236_v32 = vld [vmem:[%s1592_s20 + $0x78] sm:$0xff] }
  0x50   : > { %866 = vperm.xlu1 %1461, %v1400_v33   ;;  %862 = vperm.xlu0 %1460, %v1399_v34   ;;  %v233_v33 = vld [vmem:[%s1592_s20 + $0x60] sm:$0xff]  ;;  %v234_v34 = vld [vmem:[%s1592_s20 + $0x68] sm:$0xff] }
  0x54   : > { %874 = vperm.xlu1 %1461, %v1402_v35   ;;  %870 = vperm.xlu0 %1460, %v1401_v36  }
  0x58   : > { %882 = vperm.xlu1 %1461, %v1404_v37   ;;  %878 = vperm.xlu0 %1460, %v1403_v38  }
  0x5c   : > { %890 = vperm.xlu1 %1461, %v1406_v39   ;;  %886 = vperm.xlu0 %1460, %v1405_v40  }
  0x60   : > { %898 = vperm.xlu1 %1461, %v1408_v41   ;;  %894 = vperm.xlu0 %1460, %v1407_v42   ;;  %v239_v41 = vld [vmem:[%s1592_s20 + $0x90] sm:$0xff]  ;;  %v240_v42 = vld [vmem:[%s1592_s20 + $0x98] sm:$0xff] }
  0x64   : > { %906 = vperm.xlu1 %1461, %v1410_v43   ;;  %902 = vperm.xlu0 %1460, %v1409_v44   ;;  %v237_v43 = vld [vmem:[%s1592_s20 + $0x80] sm:$0xff]  ;;  %v238_v44 = vld [vmem:[%s1592_s20 + $0x88] sm:$0xff] }
  0x68   : > { %914 = vperm.xlu1 %1461, %v1412_v45   ;;  %910 = vperm.xlu0 %1460, %v1411_v46  }
  0x6c   : > { %922 = vperm.xlu1 %1461, %v1414_v47   ;;  %918 = vperm.xlu0 %1460, %v1413_v48  }
  0x70   : > { %930 = vperm.xlu1 %1461, %v1416_v49   ;;  %926 = vperm.xlu0 %1460, %v1415_v50  }
  0x74   : > { %938 = vperm.xlu1 %1461, %v1418_v51   ;;  %934 = vperm.xlu0 %1460, %v1417_v52   ;;  %v243_v51 = vld [vmem:[%s1592_s20 + $0xb0] sm:$0xff]  ;;  %v244_v52 = vld [vmem:[%s1592_s20 + $0xb8] sm:$0xff] }
  0x78   : > { %946 = vperm.xlu1 %1461, %v1420_v53   ;;  %942 = vperm.xlu0 %1460, %v1419_v54   ;;  %v241_v53 = vld [vmem:[%s1592_s20 + $0xa0] sm:$0xff]  ;;  %v242_v54 = vld [vmem:[%s1592_s20 + $0xa8] sm:$0xff] }
  0x7c   : > { %954 = vperm.xlu1 %1461, %v1422_v55   ;;  %950 = vperm.xlu0 %1460, %v1421_v56  }
  0x80   : > { %962 = vperm.xlu1 %1461, %v1424_v57   ;;  %958 = vperm.xlu0 %1460, %v1423_v58  }
  0x84   : > { %970 = vperm.xlu1 %1461, %v1426_v59   ;;  %966 = vperm.xlu0 %1460, %v1425_v60  }
  0x88   : > { %978 = vperm.xlu1 %1461, %v1428_v61   ;;  %974 = vperm.xlu0 %1460, %v1427_v62   ;;  %v247_v61 = vld [vmem:[%s1592_s20 + $0xd0] sm:$0xff]  ;;  %v248_v62 = vld [vmem:[%s1592_s20 + $0xd8] sm:$0xff] }
  0x8b   : > { %v743_v5 = vpop.permute.xlu1 %742  ;;  %v735_v6 = vpop.permute.xlu0 %734 }
  0x8c   : > { %v993_v7 = vmul.f32 %v743_v5, %v225_v63  ;;  %v994_v8 = vmul.f32 %v743_v5, %v226_v0  ;;  %v989_v9 = vmul.f32 %v735_v6, %v221_v1  ;;  %v990_v10 = vmul.f32 %v735_v6, %v222_v2  ;;  %986 = vperm.xlu1 %1461, %v1430_v3   ;;  %v245_v63 = vld [vmem:[%s1592_s20 + $0xc0] sm:$0xff]  ;;  %v246_v0 = vld [vmem:[%s1592_s20 + $0xc8] sm:$0xff] }
  0x8d   : > { %982 = vperm.xlu0 %1460, %v1429_v4  }
  0x8e   : > { %1122 = vst.msk [vmem:[%s1605_s23 + $0x20] sm:$0xff] %vm1117_vm0, %v993_v7  ;;  %1123 = vst.msk [vmem:[%s1605_s23 + $0x28] sm:$0xff] %vm1117_vm0, %v994_v8  ;;  %v251_v7 = vld [vmem:[%s1592_s20 + $0xf0] sm:$0xff]  ;;  %v252_v8 = vld [vmem:[%s1592_s20 + $0xf8] sm:$0xff] }
  0x8f   : > { %1118 = vst.msk [vmem:[%s1605_s23] sm:$0xff] %vm1117_vm0, %v989_v9  ;;  %1119 = vst.msk [vmem:[%s1605_s23 + $0x8] sm:$0xff] %vm1117_vm0, %v990_v10  ;;  %v747_v15 = vpop.permute.xlu1 %746  ;;  %v739_v16 = vpop.permute.xlu0 %738  ;;  %v249_v9 = vld [vmem:[%s1592_s20 + $0xe0] sm:$0xff]  ;;  %v250_v10 = vld [vmem:[%s1592_s20 + $0xe8] sm:$0xff] }
  0x90   : > { %v995_v17 = vmul.f32 %v747_v15, %v227_v11  ;;  %v996_v18 = vmul.f32 %v747_v15, %v228_v12  ;;  %v991_v19 = vmul.f32 %v739_v16, %v223_v13  ;;  %v992_v20 = vmul.f32 %v739_v16, %v224_v14 }
  0x92   : > { %1124 = vst.msk [vmem:[%s1605_s23 + $0x30] sm:$0xff] %vm1117_vm0, %v995_v17  ;;  %1125 = vst.msk [vmem:[%s1605_s23 + $0x38] sm:$0xff] %vm1117_vm0, %v996_v18  ;;  %v255_v17 = vld [vmem:[%s1592_s20 + $0x110] sm:$0xff]  ;;  %v256_v18 = vld [vmem:[%s1592_s20 + $0x118] sm:$0xff] }
  0x93   : > { %1120 = vst.msk [vmem:[%s1605_s23 + $0x10] sm:$0xff] %vm1117_vm0, %v991_v19  ;;  %1121 = vst.msk [vmem:[%s1605_s23 + $0x18] sm:$0xff] %vm1117_vm0, %v992_v20  ;;  %v755_v25 = vpop.permute.xlu1 %754  ;;  %v751_v26 = vpop.permute.xlu0 %750  ;;  %v253_v19 = vld [vmem:[%s1592_s20 + $0x100] sm:$0xff]  ;;  %v254_v20 = vld [vmem:[%s1592_s20 + $0x108] sm:$0xff] }
  0x94   : > { %v999_v27 = vmul.f32 %v755_v25, %v231_v21  ;;  %v1000_v28 = vmul.f32 %v755_v25, %v232_v22  ;;  %v997_v29 = vmul.f32 %v751_v26, %v229_v23  ;;  %v998_v30 = vmul.f32 %v751_v26, %v230_v24 }
  0x96   : > { %1128 = vst.msk [vmem:[%s1605_s23 + $0x50] sm:$0xff] %vm1117_vm0, %v999_v27  ;;  %1129 = vst.msk [vmem:[%s1605_s23 + $0x58] sm:$0xff] %vm1117_vm0, %v1000_v28  ;;  %v259_v27 = vld [vmem:[%s1592_s20 + $0x130] sm:$0xff]  ;;  %v260_v28 = vld [vmem:[%s1592_s20 + $0x138] sm:$0xff] }
  0x97   : > { %1126 = vst.msk [vmem:[%s1605_s23 + $0x40] sm:$0xff] %vm1117_vm0, %v997_v29  ;;  %1127 = vst.msk [vmem:[%s1605_s23 + $0x48] sm:$0xff] %vm1117_vm0, %v998_v30  ;;  %v763_v35 = vpop.permute.xlu1 %762  ;;  %v759_v36 = vpop.permute.xlu0 %758  ;;  %v257_v29 = vld [vmem:[%s1592_s20 + $0x120] sm:$0xff]  ;;  %v258_v30 = vld [vmem:[%s1592_s20 + $0x128] sm:$0xff] }
  0x98   : > { %v1003_v37 = vmul.f32 %v763_v35, %v235_v31  ;;  %v1004_v38 = vmul.f32 %v763_v35, %v236_v32  ;;  %v1001_v39 = vmul.f32 %v759_v36, %v233_v33  ;;  %v1002_v40 = vmul.f32 %v759_v36, %v234_v34 }
  0x9a   : > { %1132 = vst.msk [vmem:[%s1605_s23 + $0x70] sm:$0xff] %vm1117_vm0, %v1003_v37  ;;  %1133 = vst.msk [vmem:[%s1605_s23 + $0x78] sm:$0xff] %vm1117_vm0, %v1004_v38  ;;  %v263_v37 = vld [vmem:[%s1592_s20 + $0x150] sm:$0xff]  ;;  %v264_v38 = vld [vmem:[%s1592_s20 + $0x158] sm:$0xff] }
  0x9b   : > { %1130 = vst.msk [vmem:[%s1605_s23 + $0x60] sm:$0xff] %vm1117_vm0, %v1001_v39  ;;  %1131 = vst.msk [vmem:[%s1605_s23 + $0x68] sm:$0xff] %vm1117_vm0, %v1002_v40  ;;  %v771_v45 = vpop.permute.xlu1 %770  ;;  %v767_v46 = vpop.permute.xlu0 %766  ;;  %v261_v39 = vld [vmem:[%s1592_s20 + $0x140] sm:$0xff]  ;;  %v262_v40 = vld [vmem:[%s1592_s20 + $0x148] sm:$0xff] }
  0x9c   : > { %v1007_v47 = vmul.f32 %v771_v45, %v239_v41  ;;  %v1008_v48 = vmul.f32 %v771_v45, %v240_v42  ;;  %v1005_v49 = vmul.f32 %v767_v46, %v237_v43  ;;  %v1006_v50 = vmul.f32 %v767_v46, %v238_v44 }
  0x9e   : > { %1136 = vst.msk [vmem:[%s1605_s23 + $0x90] sm:$0xff] %vm1117_vm0, %v1007_v47  ;;  %1137 = vst.msk [vmem:[%s1605_s23 + $0x98] sm:$0xff] %vm1117_vm0, %v1008_v48  ;;  %v267_v47 = vld [vmem:[%s1592_s20 + $0x170] sm:$0xff]  ;;  %v268_v48 = vld [vmem:[%s1592_s20 + $0x178] sm:$0xff] }
  0x9f   : > { %1134 = vst.msk [vmem:[%s1605_s23 + $0x80] sm:$0xff] %vm1117_vm0, %v1005_v49  ;;  %1135 = vst.msk [vmem:[%s1605_s23 + $0x88] sm:$0xff] %vm1117_vm0, %v1006_v50  ;;  %v779_v55 = vpop.permute.xlu1 %778  ;;  %v775_v56 = vpop.permute.xlu0 %774  ;;  %v265_v49 = vld [vmem:[%s1592_s20 + $0x160] sm:$0xff]  ;;  %v266_v50 = vld [vmem:[%s1592_s20 + $0x168] sm:$0xff] }
  0xa0   : > { %v1011_v57 = vmul.f32 %v779_v55, %v243_v51  ;;  %v1012_v58 = vmul.f32 %v779_v55, %v244_v52  ;;  %v1009_v59 = vmul.f32 %v775_v56, %v241_v53  ;;  %v1010_v60 = vmul.f32 %v775_v56, %v242_v54 }
  0xa2   : > { %1140 = vst.msk [vmem:[%s1605_s23 + $0xb0] sm:$0xff] %vm1117_vm0, %v1011_v57  ;;  %1141 = vst.msk [vmem:[%s1605_s23 + $0xb8] sm:$0xff] %vm1117_vm0, %v1012_v58  ;;  %v271_v57 = vld [vmem:[%s1592_s20 + $0x190] sm:$0xff]  ;;  %v272_v58 = vld [vmem:[%s1592_s20 + $0x198] sm:$0xff] }
  0xa3   : > { %1138 = vst.msk [vmem:[%s1605_s23 + $0xa0] sm:$0xff] %vm1117_vm0, %v1009_v59  ;;  %1139 = vst.msk [vmem:[%s1605_s23 + $0xa8] sm:$0xff] %vm1117_vm0, %v1010_v60  ;;  %v787_v1 = vpop.permute.xlu1 %786  ;;  %v783_v2 = vpop.permute.xlu0 %782  ;;  %v269_v59 = vld [vmem:[%s1592_s20 + $0x180] sm:$0xff]  ;;  %v270_v60 = vld [vmem:[%s1592_s20 + $0x188] sm:$0xff] }
  0xa4   : > { %v1015_v3 = vmul.f32 %v787_v1, %v247_v61  ;;  %v1016_v4 = vmul.f32 %v787_v1, %v248_v62  ;;  %v1013_v5 = vmul.f32 %v783_v2, %v245_v63  ;;  %v1014_v6 = vmul.f32 %v783_v2, %v246_v0 }
  0xa6   : > { %1144 = vst.msk [vmem:[%s1605_s23 + $0xd0] sm:$0xff] %vm1117_vm0, %v1015_v3  ;;  %1145 = vst.msk [vmem:[%s1605_s23 + $0xd8] sm:$0xff] %vm1117_vm0, %v1016_v4  ;;  %v275_v3 = vld [vmem:[%s1592_s20 + $0x1b0] sm:$0xff]  ;;  %v276_v4 = vld [vmem:[%s1592_s20 + $0x1b8] sm:$0xff] }
  0xa7   : > { %1142 = vst.msk [vmem:[%s1605_s23 + $0xc0] sm:$0xff] %vm1117_vm0, %v1013_v5  ;;  %1143 = vst.msk [vmem:[%s1605_s23 + $0xc8] sm:$0xff] %vm1117_vm0, %v1014_v6  ;;  %v795_v11 = vpop.permute.xlu1 %794  ;;  %v791_v12 = vpop.permute.xlu0 %790  ;;  %v273_v5 = vld [vmem:[%s1592_s20 + $0x1a0] sm:$0xff]  ;;  %v274_v6 = vld [vmem:[%s1592_s20 + $0x1a8] sm:$0xff] }
  0xa8   : > { %v1019_v13 = vmul.f32 %v795_v11, %v251_v7  ;;  %v1020_v14 = vmul.f32 %v795_v11, %v252_v8  ;;  %v1017_v15 = vmul.f32 %v791_v12, %v249_v9  ;;  %v1018_v16 = vmul.f32 %v791_v12, %v250_v10 }
  0xaa   : > { %1148 = vst.msk [vmem:[%s1605_s23 + $0xf0] sm:$0xff] %vm1117_vm0, %v1019_v13  ;;  %1149 = vst.msk [vmem:[%s1605_s23 + $0xf8] sm:$0xff] %vm1117_vm0, %v1020_v14  ;;  %v279_v13 = vld [vmem:[%s1592_s20 + $0x1d0] sm:$0xff]  ;;  %v280_v14 = vld [vmem:[%s1592_s20 + $0x1d8] sm:$0xff] }
  0xab   : > { %1146 = vst.msk [vmem:[%s1605_s23 + $0xe0] sm:$0xff] %vm1117_vm0, %v1017_v15  ;;  %1147 = vst.msk [vmem:[%s1605_s23 + $0xe8] sm:$0xff] %vm1117_vm0, %v1018_v16  ;;  %v803_v21 = vpop.permute.xlu1 %802  ;;  %v799_v22 = vpop.permute.xlu0 %798  ;;  %v277_v15 = vld [vmem:[%s1592_s20 + $0x1c0] sm:$0xff]  ;;  %v278_v16 = vld [vmem:[%s1592_s20 + $0x1c8] sm:$0xff] }
  0xac   : > { %v1023_v23 = vmul.f32 %v803_v21, %v255_v17  ;;  %v1024_v24 = vmul.f32 %v803_v21, %v256_v18  ;;  %v1021_v25 = vmul.f32 %v799_v22, %v253_v19  ;;  %v1022_v26 = vmul.f32 %v799_v22, %v254_v20 }
  0xae   : > { %1152 = vst.msk [vmem:[%s1605_s23 + $0x110] sm:$0xff] %vm1117_vm0, %v1023_v23  ;;  %1153 = vst.msk [vmem:[%s1605_s23 + $0x118] sm:$0xff] %vm1117_vm0, %v1024_v24  ;;  %v283_v23 = vld [vmem:[%s1592_s20 + $0x1f0] sm:$0xff]  ;;  %v284_v24 = vld [vmem:[%s1592_s20 + $0x1f8] sm:$0xff] }
  0xaf   : > { %1150 = vst.msk [vmem:[%s1605_s23 + $0x100] sm:$0xff] %vm1117_vm0, %v1021_v25  ;;  %1151 = vst.msk [vmem:[%s1605_s23 + $0x108] sm:$0xff] %vm1117_vm0, %v1022_v26  ;;  %v811_v31 = vpop.permute.xlu1 %810  ;;  %v807_v32 = vpop.permute.xlu0 %806  ;;  %v281_v25 = vld [vmem:[%s1592_s20 + $0x1e0] sm:$0xff]  ;;  %v282_v26 = vld [vmem:[%s1592_s20 + $0x1e8] sm:$0xff] }
  0xb0   : > { %v1027_v33 = vmul.f32 %v811_v31, %v259_v27  ;;  %v1028_v34 = vmul.f32 %v811_v31, %v260_v28  ;;  %v1025_v35 = vmul.f32 %v807_v32, %v257_v29  ;;  %v1026_v36 = vmul.f32 %v807_v32, %v258_v30 }
  0xb2   : > { %1156 = vst.msk [vmem:[%s1605_s23 + $0x130] sm:$0xff] %vm1117_vm0, %v1027_v33  ;;  %1157 = vst.msk [vmem:[%s1605_s23 + $0x138] sm:$0xff] %vm1117_vm0, %v1028_v34  ;;  %v287_v33 = vld [vmem:[%s1592_s20 + $0x210] sm:$0xff]  ;;  %v288_v34 = vld [vmem:[%s1592_s20 + $0x218] sm:$0xff] }
  0xb3   : > { %1154 = vst.msk [vmem:[%s1605_s23 + $0x120] sm:$0xff] %vm1117_vm0, %v1025_v35  ;;  %1155 = vst.msk [vmem:[%s1605_s23 + $0x128] sm:$0xff] %vm1117_vm0, %v1026_v36  ;;  %v819_v41 = vpop.permute.xlu1 %818  ;;  %v815_v42 = vpop.permute.xlu0 %814  ;;  %v285_v35 = vld [vmem:[%s1592_s20 + $0x200] sm:$0xff]  ;;  %v286_v36 = vld [vmem:[%s1592_s20 + $0x208] sm:$0xff] }
  0xb4   : > { %v1031_v43 = vmul.f32 %v819_v41, %v263_v37  ;;  %v1032_v44 = vmul.f32 %v819_v41, %v264_v38  ;;  %v1029_v45 = vmul.f32 %v815_v42, %v261_v39  ;;  %v1030_v46 = vmul.f32 %v815_v42, %v262_v40 }
  0xb6   : > { %1160 = vst.msk [vmem:[%s1605_s23 + $0x150] sm:$0xff] %vm1117_vm0, %v1031_v43  ;;  %1161 = vst.msk [vmem:[%s1605_s23 + $0x158] sm:$0xff] %vm1117_vm0, %v1032_v44  ;;  %v291_v43 = vld [vmem:[%s1592_s20 + $0x230] sm:$0xff]  ;;  %v292_v44 = vld [vmem:[%s1592_s20 + $0x238] sm:$0xff] }
  0xb7   : > { %1158 = vst.msk [vmem:[%s1605_s23 + $0x140] sm:$0xff] %vm1117_vm0, %v1029_v45  ;;  %1159 = vst.msk [vmem:[%s1605_s23 + $0x148] sm:$0xff] %vm1117_vm0, %v1030_v46  ;;  %v827_v51 = vpop.permute.xlu1 %826  ;;  %v823_v52 = vpop.permute.xlu0 %822  ;;  %v289_v45 = vld [vmem:[%s1592_s20 + $0x220] sm:$0xff]  ;;  %v290_v46 = vld [vmem:[%s1592_s20 + $0x228] sm:$0xff] }
  0xb8   : > { %v1035_v53 = vmul.f32 %v827_v51, %v267_v47  ;;  %v1036_v54 = vmul.f32 %v827_v51, %v268_v48  ;;  %v1033_v55 = vmul.f32 %v823_v52, %v265_v49  ;;  %v1034_v56 = vmul.f32 %v823_v52, %v266_v50 }
  0xba   : > { %1164 = vst.msk [vmem:[%s1605_s23 + $0x170] sm:$0xff] %vm1117_vm0, %v1035_v53  ;;  %1165 = vst.msk [vmem:[%s1605_s23 + $0x178] sm:$0xff] %vm1117_vm0, %v1036_v54  ;;  %v295_v53 = vld [vmem:[%s1592_s20 + $0x250] sm:$0xff]  ;;  %v296_v54 = vld [vmem:[%s1592_s20 + $0x258] sm:$0xff] }
  0xbb   : > { %1162 = vst.msk [vmem:[%s1605_s23 + $0x160] sm:$0xff] %vm1117_vm0, %v1033_v55  ;;  %1163 = vst.msk [vmem:[%s1605_s23 + $0x168] sm:$0xff] %vm1117_vm0, %v1034_v56  ;;  %v835_v61 = vpop.permute.xlu1 %834  ;;  %v831_v62 = vpop.permute.xlu0 %830  ;;  %v293_v55 = vld [vmem:[%s1592_s20 + $0x240] sm:$0xff]  ;;  %v294_v56 = vld [vmem:[%s1592_s20 + $0x248] sm:$0xff] }
  0xbc   : > { %v1039_v63 = vmul.f32 %v835_v61, %v271_v57  ;;  %v1040_v0 = vmul.f32 %v835_v61, %v272_v58  ;;  %v1037_v1 = vmul.f32 %v831_v62, %v269_v59  ;;  %v1038_v2 = vmul.f32 %v831_v62, %v270_v60 }
  0xbe   : > { %1168 = vst.msk [vmem:[%s1605_s23 + $0x190] sm:$0xff] %vm1117_vm0, %v1039_v63  ;;  %1169 = vst.msk [vmem:[%s1605_s23 + $0x198] sm:$0xff] %vm1117_vm0, %v1040_v0  ;;  %v299_v63 = vld [vmem:[%s1592_s20 + $0x270] sm:$0xff]  ;;  %v300_v0 = vld [vmem:[%s1592_s20 + $0x278] sm:$0xff] }
  0xbf   : > { %1166 = vst.msk [vmem:[%s1605_s23 + $0x180] sm:$0xff] %vm1117_vm0, %v1037_v1  ;;  %1167 = vst.msk [vmem:[%s1605_s23 + $0x188] sm:$0xff] %vm1117_vm0, %v1038_v2  ;;  %v843_v7 = vpop.permute.xlu1 %842  ;;  %v839_v8 = vpop.permute.xlu0 %838  ;;  %v297_v1 = vld [vmem:[%s1592_s20 + $0x260] sm:$0xff]  ;;  %v298_v2 = vld [vmem:[%s1592_s20 + $0x268] sm:$0xff] }
  0xc0   : > { %v1043_v9 = vmul.f32 %v843_v7, %v275_v3  ;;  %v1044_v10 = vmul.f32 %v843_v7, %v276_v4  ;;  %v1041_v11 = vmul.f32 %v839_v8, %v273_v5  ;;  %v1042_v12 = vmul.f32 %v839_v8, %v274_v6 }
  0xc2   : > { %1172 = vst.msk [vmem:[%s1605_s23 + $0x1b0] sm:$0xff] %vm1117_vm0, %v1043_v9  ;;  %1173 = vst.msk [vmem:[%s1605_s23 + $0x1b8] sm:$0xff] %vm1117_vm0, %v1044_v10  ;;  %v303_v9 = vld [vmem:[%s1592_s20 + $0x290] sm:$0xff]  ;;  %v304_v10 = vld [vmem:[%s1592_s20 + $0x298] sm:$0xff] }
  0xc3   : > { %1170 = vst.msk [vmem:[%s1605_s23 + $0x1a0] sm:$0xff] %vm1117_vm0, %v1041_v11  ;;  %1171 = vst.msk [vmem:[%s1605_s23 + $0x1a8] sm:$0xff] %vm1117_vm0, %v1042_v12  ;;  %v851_v17 = vpop.permute.xlu1 %850  ;;  %v847_v18 = vpop.permute.xlu0 %846  ;;  %v301_v11 = vld [vmem:[%s1592_s20 + $0x280] sm:$0xff]  ;;  %v302_v12 = vld [vmem:[%s1592_s20 + $0x288] sm:$0xff] }
  0xc4   : > { %v1047_v19 = vmul.f32 %v851_v17, %v279_v13  ;;  %v1048_v20 = vmul.f32 %v851_v17, %v280_v14  ;;  %v1045_v21 = vmul.f32 %v847_v18, %v277_v15  ;;  %v1046_v22 = vmul.f32 %v847_v18, %v278_v16 }
  0xc6   : > { %1176 = vst.msk [vmem:[%s1605_s23 + $0x1d0] sm:$0xff] %vm1117_vm0, %v1047_v19  ;;  %1177 = vst.msk [vmem:[%s1605_s23 + $0x1d8] sm:$0xff] %vm1117_vm0, %v1048_v20  ;;  %v307_v19 = vld [vmem:[%s1592_s20 + $0x2b0] sm:$0xff]  ;;  %v308_v20 = vld [vmem:[%s1592_s20 + $0x2b8] sm:$0xff] }
  0xc7   : > { %1174 = vst.msk [vmem:[%s1605_s23 + $0x1c0] sm:$0xff] %vm1117_vm0, %v1045_v21  ;;  %1175 = vst.msk [vmem:[%s1605_s23 + $0x1c8] sm:$0xff] %vm1117_vm0, %v1046_v22  ;;  %v859_v27 = vpop.permute.xlu1 %858  ;;  %v855_v28 = vpop.permute.xlu0 %854  ;;  %v305_v21 = vld [vmem:[%s1592_s20 + $0x2a0] sm:$0xff]  ;;  %v306_v22 = vld [vmem:[%s1592_s20 + $0x2a8] sm:$0xff] }
  0xc8   : > { %v1051_v29 = vmul.f32 %v859_v27, %v283_v23  ;;  %v1052_v30 = vmul.f32 %v859_v27, %v284_v24  ;;  %v1049_v31 = vmul.f32 %v855_v28, %v281_v25  ;;  %v1050_v32 = vmul.f32 %v855_v28, %v282_v26 }
  0xca   : > { %1180 = vst.msk [vmem:[%s1605_s23 + $0x1f0] sm:$0xff] %vm1117_vm0, %v1051_v29  ;;  %1181 = vst.msk [vmem:[%s1605_s23 + $0x1f8] sm:$0xff] %vm1117_vm0, %v1052_v30  ;;  %v311_v29 = vld [vmem:[%s1592_s20 + $0x2d0] sm:$0xff]  ;;  %v312_v30 = vld [vmem:[%s1592_s20 + $0x2d8] sm:$0xff] }
  0xcb   : > { %1178 = vst.msk [vmem:[%s1605_s23 + $0x1e0] sm:$0xff] %vm1117_vm0, %v1049_v31  ;;  %1179 = vst.msk [vmem:[%s1605_s23 + $0x1e8] sm:$0xff] %vm1117_vm0, %v1050_v32  ;;  %v867_v37 = vpop.permute.xlu1 %866  ;;  %v863_v38 = vpop.permute.xlu0 %862  ;;  %v309_v31 = vld [vmem:[%s1592_s20 + $0x2c0] sm:$0xff]  ;;  %v310_v32 = vld [vmem:[%s1592_s20 + $0x2c8] sm:$0xff] }
  0xcc   : > { %v1055_v39 = vmul.f32 %v867_v37, %v287_v33  ;;  %v1056_v40 = vmul.f32 %v867_v37, %v288_v34  ;;  %v1053_v41 = vmul.f32 %v863_v38, %v285_v35  ;;  %v1054_v42 = vmul.f32 %v863_v38, %v286_v36 }
  0xce   : > { %1184 = vst.msk [vmem:[%s1605_s23 + $0x210] sm:$0xff] %vm1117_vm0, %v1055_v39  ;;  %1185 = vst.msk [vmem:[%s1605_s23 + $0x218] sm:$0xff] %vm1117_vm0, %v1056_v40  ;;  %v315_v39 = vld [vmem:[%s1592_s20 + $0x2f0] sm:$0xff]  ;;  %v316_v40 = vld [vmem:[%s1592_s20 + $0x2f8] sm:$0xff] }
  0xcf   : > { %1182 = vst.msk [vmem:[%s1605_s23 + $0x200] sm:$0xff] %vm1117_vm0, %v1053_v41  ;;  %1183 = vst.msk [vmem:[%s1605_s23 + $0x208] sm:$0xff] %vm1117_vm0, %v1054_v42  ;;  %v875_v47 = vpop.permute.xlu1 %874  ;;  %v871_v48 = vpop.permute.xlu0 %870  ;;  %v313_v41 = vld [vmem:[%s1592_s20 + $0x2e0] sm:$0xff]  ;;  %v314_v42 = vld [vmem:[%s1592_s20 + $0x2e8] sm:$0xff] }
  0xd0   : > { %v1059_v49 = vmul.f32 %v875_v47, %v291_v43  ;;  %v1060_v50 = vmul.f32 %v875_v47, %v292_v44  ;;  %v1057_v51 = vmul.f32 %v871_v48, %v289_v45  ;;  %v1058_v52 = vmul.f32 %v871_v48, %v290_v46 }
  0xd2   : > { %1188 = vst.msk [vmem:[%s1605_s23 + $0x230] sm:$0xff] %vm1117_vm0, %v1059_v49  ;;  %1189 = vst.msk [vmem:[%s1605_s23 + $0x238] sm:$0xff] %vm1117_vm0, %v1060_v50  ;;  %v319_v49 = vld [vmem:[%s1592_s20 + $0x310] sm:$0xff]  ;;  %v320_v50 = vld [vmem:[%s1592_s20 + $0x318] sm:$0xff] }
  0xd3   : > { %1186 = vst.msk [vmem:[%s1605_s23 + $0x220] sm:$0xff] %vm1117_vm0, %v1057_v51  ;;  %1187 = vst.msk [vmem:[%s1605_s23 + $0x228] sm:$0xff] %vm1117_vm0, %v1058_v52  ;;  %v883_v57 = vpop.permute.xlu1 %882  ;;  %v879_v58 = vpop.permute.xlu0 %878  ;;  %v317_v51 = vld [vmem:[%s1592_s20 + $0x300] sm:$0xff]  ;;  %v318_v52 = vld [vmem:[%s1592_s20 + $0x308] sm:$0xff] }
  0xd4   : > { %v1063_v59 = vmul.f32 %v883_v57, %v295_v53  ;;  %v1064_v60 = vmul.f32 %v883_v57, %v296_v54  ;;  %v1061_v61 = vmul.f32 %v879_v58, %v293_v55  ;;  %v1062_v62 = vmul.f32 %v879_v58, %v294_v56 }
  0xd6   : > { %1192 = vst.msk [vmem:[%s1605_s23 + $0x250] sm:$0xff] %vm1117_vm0, %v1063_v59  ;;  %1193 = vst.msk [vmem:[%s1605_s23 + $0x258] sm:$0xff] %vm1117_vm0, %v1064_v60  ;;  %v323_v59 = vld [vmem:[%s1592_s20 + $0x330] sm:$0xff]  ;;  %v324_v60 = vld [vmem:[%s1592_s20 + $0x338] sm:$0xff] }
  0xd7   : > { %1190 = vst.msk [vmem:[%s1605_s23 + $0x240] sm:$0xff] %vm1117_vm0, %v1061_v61  ;;  %1191 = vst.msk [vmem:[%s1605_s23 + $0x248] sm:$0xff] %vm1117_vm0, %v1062_v62  ;;  %v891_v3 = vpop.permute.xlu1 %890  ;;  %v887_v4 = vpop.permute.xlu0 %886  ;;  %v321_v61 = vld [vmem:[%s1592_s20 + $0x320] sm:$0xff]  ;;  %v322_v62 = vld [vmem:[%s1592_s20 + $0x328] sm:$0xff] }
  0xd8   : > { %v1067_v5 = vmul.f32 %v891_v3, %v299_v63  ;;  %v1068_v6 = vmul.f32 %v891_v3, %v300_v0  ;;  %v1065_v7 = vmul.f32 %v887_v4, %v297_v1  ;;  %v1066_v8 = vmul.f32 %v887_v4, %v298_v2 }
  0xda   : > { %1196 = vst.msk [vmem:[%s1605_s23 + $0x270] sm:$0xff] %vm1117_vm0, %v1067_v5  ;;  %1197 = vst.msk [vmem:[%s1605_s23 + $0x278] sm:$0xff] %vm1117_vm0, %v1068_v6  ;;  %v327_v5 = vld [vmem:[%s1592_s20 + $0x350] sm:$0xff]  ;;  %v328_v6 = vld [vmem:[%s1592_s20 + $0x358] sm:$0xff] }
  0xdb   : > { %1194 = vst.msk [vmem:[%s1605_s23 + $0x260] sm:$0xff] %vm1117_vm0, %v1065_v7  ;;  %1195 = vst.msk [vmem:[%s1605_s23 + $0x268] sm:$0xff] %vm1117_vm0, %v1066_v8  ;;  %v899_v13 = vpop.permute.xlu1 %898  ;;  %v895_v14 = vpop.permute.xlu0 %894  ;;  %v325_v7 = vld [vmem:[%s1592_s20 + $0x340] sm:$0xff]  ;;  %v326_v8 = vld [vmem:[%s1592_s20 + $0x348] sm:$0xff] }
  0xdc   : > { %v1071_v15 = vmul.f32 %v899_v13, %v303_v9  ;;  %v1072_v16 = vmul.f32 %v899_v13, %v304_v10  ;;  %v1069_v17 = vmul.f32 %v895_v14, %v301_v11  ;;  %v1070_v18 = vmul.f32 %v895_v14, %v302_v12 }
  0xde   : > { %1200 = vst.msk [vmem:[%s1605_s23 + $0x290] sm:$0xff] %vm1117_vm0, %v1071_v15  ;;  %1201 = vst.msk [vmem:[%s1605_s23 + $0x298] sm:$0xff] %vm1117_vm0, %v1072_v16  ;;  %v331_v15 = vld [vmem:[%s1592_s20 + $0x370] sm:$0xff]  ;;  %v332_v16 = vld [vmem:[%s1592_s20 + $0x378] sm:$0xff] }
  0xdf   : > { %1198 = vst.msk [vmem:[%s1605_s23 + $0x280] sm:$0xff] %vm1117_vm0, %v1069_v17  ;;  %1199 = vst.msk [vmem:[%s1605_s23 + $0x288] sm:$0xff] %vm1117_vm0, %v1070_v18  ;;  %v907_v23 = vpop.permute.xlu1 %906  ;;  %v903_v24 = vpop.permute.xlu0 %902  ;;  %v329_v17 = vld [vmem:[%s1592_s20 + $0x360] sm:$0xff]  ;;  %v330_v18 = vld [vmem:[%s1592_s20 + $0x368] sm:$0xff] }
  0xe0   : > { %v1075_v25 = vmul.f32 %v907_v23, %v307_v19  ;;  %v1076_v26 = vmul.f32 %v907_v23, %v308_v20  ;;  %v1073_v27 = vmul.f32 %v903_v24, %v305_v21  ;;  %v1074_v28 = vmul.f32 %v903_v24, %v306_v22 }
  0xe2   : > { %1204 = vst.msk [vmem:[%s1605_s23 + $0x2b0] sm:$0xff] %vm1117_vm0, %v1075_v25  ;;  %1205 = vst.msk [vmem:[%s1605_s23 + $0x2b8] sm:$0xff] %vm1117_vm0, %v1076_v26  ;;  %v335_v25 = vld [vmem:[%s1592_s20 + $0x390] sm:$0xff]  ;;  %v336_v26 = vld [vmem:[%s1592_s20 + $0x398] sm:$0xff] }
  0xe3   : > { %1202 = vst.msk [vmem:[%s1605_s23 + $0x2a0] sm:$0xff] %vm1117_vm0, %v1073_v27  ;;  %1203 = vst.msk [vmem:[%s1605_s23 + $0x2a8] sm:$0xff] %vm1117_vm0, %v1074_v28  ;;  %v915_v33 = vpop.permute.xlu1 %914  ;;  %v911_v34 = vpop.permute.xlu0 %910  ;;  %v333_v27 = vld [vmem:[%s1592_s20 + $0x380] sm:$0xff]  ;;  %v334_v28 = vld [vmem:[%s1592_s20 + $0x388] sm:$0xff] }
  0xe4   : > { %v1079_v35 = vmul.f32 %v915_v33, %v311_v29  ;;  %v1080_v36 = vmul.f32 %v915_v33, %v312_v30  ;;  %v1077_v37 = vmul.f32 %v911_v34, %v309_v31  ;;  %v1078_v38 = vmul.f32 %v911_v34, %v310_v32 }
  0xe6   : > { %1208 = vst.msk [vmem:[%s1605_s23 + $0x2d0] sm:$0xff] %vm1117_vm0, %v1079_v35  ;;  %1209 = vst.msk [vmem:[%s1605_s23 + $0x2d8] sm:$0xff] %vm1117_vm0, %v1080_v36  ;;  %v339_v35 = vld [vmem:[%s1592_s20 + $0x3b0] sm:$0xff]  ;;  %v340_v36 = vld [vmem:[%s1592_s20 + $0x3b8] sm:$0xff] }
  0xe7   : > { %1206 = vst.msk [vmem:[%s1605_s23 + $0x2c0] sm:$0xff] %vm1117_vm0, %v1077_v37  ;;  %1207 = vst.msk [vmem:[%s1605_s23 + $0x2c8] sm:$0xff] %vm1117_vm0, %v1078_v38  ;;  %v923_v43 = vpop.permute.xlu1 %922  ;;  %v919_v44 = vpop.permute.xlu0 %918  ;;  %v337_v37 = vld [vmem:[%s1592_s20 + $0x3a0] sm:$0xff]  ;;  %v338_v38 = vld [vmem:[%s1592_s20 + $0x3a8] sm:$0xff] }
  0xe8   : > { %v1083_v45 = vmul.f32 %v923_v43, %v315_v39  ;;  %v1084_v46 = vmul.f32 %v923_v43, %v316_v40  ;;  %v1081_v47 = vmul.f32 %v919_v44, %v313_v41  ;;  %v1082_v48 = vmul.f32 %v919_v44, %v314_v42 }
  0xea   : > { %1212 = vst.msk [vmem:[%s1605_s23 + $0x2f0] sm:$0xff] %vm1117_vm0, %v1083_v45  ;;  %1213 = vst.msk [vmem:[%s1605_s23 + $0x2f8] sm:$0xff] %vm1117_vm0, %v1084_v46  ;;  %v343_v45 = vld [vmem:[%s1592_s20 + $0x3d0] sm:$0xff]  ;;  %v344_v46 = vld [vmem:[%s1592_s20 + $0x3d8] sm:$0xff] }
  0xeb   : > { %1210 = vst.msk [vmem:[%s1605_s23 + $0x2e0] sm:$0xff] %vm1117_vm0, %v1081_v47  ;;  %1211 = vst.msk [vmem:[%s1605_s23 + $0x2e8] sm:$0xff] %vm1117_vm0, %v1082_v48  ;;  %v931_v53 = vpop.permute.xlu1 %930  ;;  %v927_v54 = vpop.permute.xlu0 %926  ;;  %v341_v47 = vld [vmem:[%s1592_s20 + $0x3c0] sm:$0xff]  ;;  %v342_v48 = vld [vmem:[%s1592_s20 + $0x3c8] sm:$0xff] }
  0xec   : > { %v1087_v55 = vmul.f32 %v931_v53, %v319_v49  ;;  %v1088_v56 = vmul.f32 %v931_v53, %v320_v50  ;;  %v1085_v57 = vmul.f32 %v927_v54, %v317_v51  ;;  %v1086_v58 = vmul.f32 %v927_v54, %v318_v52 }
  0xee   : > { %1216 = vst.msk [vmem:[%s1605_s23 + $0x310] sm:$0xff] %vm1117_vm0, %v1087_v55  ;;  %1217 = vst.msk [vmem:[%s1605_s23 + $0x318] sm:$0xff] %vm1117_vm0, %v1088_v56  ;;  %v347_v55 = vld [vmem:[%s1592_s20 + $0x3f0] sm:$0xff]  ;;  %v348_v56 = vld [vmem:[%s1592_s20 + $0x3f8] sm:$0xff] }
  0xef   : > { %1214 = vst.msk [vmem:[%s1605_s23 + $0x300] sm:$0xff] %vm1117_vm0, %v1085_v57  ;;  %1215 = vst.msk [vmem:[%s1605_s23 + $0x308] sm:$0xff] %vm1117_vm0, %v1086_v58  ;;  %v939_v63 = vpop.permute.xlu1 %938  ;;  %v935_v0 = vpop.permute.xlu0 %934  ;;  %v345_v57 = vld [vmem:[%s1592_s20 + $0x3e0] sm:$0xff]  ;;  %v346_v58 = vld [vmem:[%s1592_s20 + $0x3e8] sm:$0xff] }
  0xf0   : > { %v1091_v1 = vmul.f32 %v939_v63, %v323_v59  ;;  %v1092_v2 = vmul.f32 %v939_v63, %v324_v60  ;;  %v1089_v3 = vmul.f32 %v935_v0, %v321_v61  ;;  %v1090_v4 = vmul.f32 %v935_v0, %v322_v62 }
  0xf2   : > { %1220 = vst.msk [vmem:[%s1605_s23 + $0x330] sm:$0xff] %vm1117_vm0, %v1091_v1  ;;  %1221 = vst.msk [vmem:[%s1605_s23 + $0x338] sm:$0xff] %vm1117_vm0, %v1092_v2 }
  0xf3   : > { %1218 = vst.msk [vmem:[%s1605_s23 + $0x320] sm:$0xff] %vm1117_vm0, %v1089_v3  ;;  %1219 = vst.msk [vmem:[%s1605_s23 + $0x328] sm:$0xff] %vm1117_vm0, %v1090_v4  ;;  %v947_v9 = vpop.permute.xlu1 %946  ;;  %v943_v10 = vpop.permute.xlu0 %942 }
  0xf4   : > { %v1095_v11 = vmul.f32 %v947_v9, %v327_v5  ;;  %v1096_v12 = vmul.f32 %v947_v9, %v328_v6  ;;  %v1093_v13 = vmul.f32 %v943_v10, %v325_v7  ;;  %v1094_v14 = vmul.f32 %v943_v10, %v326_v8 }
  0xf6   : > { %1224 = vst.msk [vmem:[%s1605_s23 + $0x350] sm:$0xff] %vm1117_vm0, %v1095_v11  ;;  %1225 = vst.msk [vmem:[%s1605_s23 + $0x358] sm:$0xff] %vm1117_vm0, %v1096_v12 }
  0xf7   : > { %1222 = vst.msk [vmem:[%s1605_s23 + $0x340] sm:$0xff] %vm1117_vm0, %v1093_v13  ;;  %1223 = vst.msk [vmem:[%s1605_s23 + $0x348] sm:$0xff] %vm1117_vm0, %v1094_v14  ;;  %v955_v19 = vpop.permute.xlu1 %954  ;;  %v951_v20 = vpop.permute.xlu0 %950 }
  0xf8   : > { %v1099_v21 = vmul.f32 %v955_v19, %v331_v15  ;;  %v1100_v22 = vmul.f32 %v955_v19, %v332_v16  ;;  %v1097_v23 = vmul.f32 %v951_v20, %v329_v17  ;;  %v1098_v24 = vmul.f32 %v951_v20, %v330_v18 }
  0xfa   : > { %1228 = vst.msk [vmem:[%s1605_s23 + $0x370] sm:$0xff] %vm1117_vm0, %v1099_v21  ;;  %1229 = vst.msk [vmem:[%s1605_s23 + $0x378] sm:$0xff] %vm1117_vm0, %v1100_v22 }
  0xfb   : > { %1226 = vst.msk [vmem:[%s1605_s23 + $0x360] sm:$0xff] %vm1117_vm0, %v1097_v23  ;;  %1227 = vst.msk [vmem:[%s1605_s23 + $0x368] sm:$0xff] %vm1117_vm0, %v1098_v24  ;;  %v963_v29 = vpop.permute.xlu1 %962  ;;  %v959_v30 = vpop.permute.xlu0 %958 }
  0xfc   : > { %v1103_v31 = vmul.f32 %v963_v29, %v335_v25  ;;  %v1104_v32 = vmul.f32 %v963_v29, %v336_v26  ;;  %v1101_v33 = vmul.f32 %v959_v30, %v333_v27  ;;  %v1102_v34 = vmul.f32 %v959_v30, %v334_v28 }
  0xfe   : > { %1232 = vst.msk [vmem:[%s1605_s23 + $0x390] sm:$0xff] %vm1117_vm0, %v1103_v31  ;;  %1233 = vst.msk [vmem:[%s1605_s23 + $0x398] sm:$0xff] %vm1117_vm0, %v1104_v32 }
  0xff   : > { %1230 = vst.msk [vmem:[%s1605_s23 + $0x380] sm:$0xff] %vm1117_vm0, %v1101_v33  ;;  %1231 = vst.msk [vmem:[%s1605_s23 + $0x388] sm:$0xff] %vm1117_vm0, %v1102_v34  ;;  %v971_v39 = vpop.permute.xlu1 %970  ;;  %v967_v40 = vpop.permute.xlu0 %966 }
 0x100   : > { %v1107_v41 = vmul.f32 %v971_v39, %v339_v35  ;;  %v1108_v42 = vmul.f32 %v971_v39, %v340_v36  ;;  %v1105_v43 = vmul.f32 %v967_v40, %v337_v37  ;;  %v1106_v44 = vmul.f32 %v967_v40, %v338_v38 }
 0x102   : > { %1236 = vst.msk [vmem:[%s1605_s23 + $0x3b0] sm:$0xff] %vm1117_vm0, %v1107_v41  ;;  %1237 = vst.msk [vmem:[%s1605_s23 + $0x3b8] sm:$0xff] %vm1117_vm0, %v1108_v42 }
 0x103   : > { %1234 = vst.msk [vmem:[%s1605_s23 + $0x3a0] sm:$0xff] %vm1117_vm0, %v1105_v43  ;;  %1235 = vst.msk [vmem:[%s1605_s23 + $0x3a8] sm:$0xff] %vm1117_vm0, %v1106_v44  ;;  %v979_v49 = vpop.permute.xlu1 %978  ;;  %v975_v50 = vpop.permute.xlu0 %974 }
 0x104   : > { %v1111_v51 = vmul.f32 %v979_v49, %v343_v45  ;;  %v1112_v52 = vmul.f32 %v979_v49, %v344_v46  ;;  %v1109_v53 = vmul.f32 %v975_v50, %v341_v47  ;;  %v1110_v54 = vmul.f32 %v975_v50, %v342_v48 }
 0x106   : > { %1240 = vst.msk [vmem:[%s1605_s23 + $0x3d0] sm:$0xff] %vm1117_vm0, %v1111_v51  ;;  %1241 = vst.msk [vmem:[%s1605_s23 + $0x3d8] sm:$0xff] %vm1117_vm0, %v1112_v52 }
 0x107   : > { %1238 = vst.msk [vmem:[%s1605_s23 + $0x3c0] sm:$0xff] %vm1117_vm0, %v1109_v53  ;;  %1239 = vst.msk [vmem:[%s1605_s23 + $0x3c8] sm:$0xff] %vm1117_vm0, %v1110_v54  ;;  %v987_v59 = vpop.permute.xlu1 %986 }
 0x108   : > { %v1115_v60 = vmul.f32 %v987_v59, %v347_v55  ;;  %v1116_v61 = vmul.f32 %v987_v59, %v348_v56  ;;  %v983_v62 = vpop.permute.xlu0 %982 }
 0x109   : > { %v1113_v63 = vmul.f32 %v983_v62, %v345_v57  ;;  %v1114_v0 = vmul.f32 %v983_v62, %v346_v58 }
 0x10a   : > { %1244 = vst.msk [vmem:[%s1605_s23 + $0x3f0] sm:$0xff] %vm1117_vm0, %v1115_v60  ;;  %1245 = vst.msk [vmem:[%s1605_s23 + $0x3f8] sm:$0xff] %vm1117_vm0, %v1116_v61 }
 0x10b   : > { %1242 = vst.msk [vmem:[%s1605_s23 + $0x3e0] sm:$0xff] %vm1117_vm0, %v1113_v63  ;;  %1243 = vst.msk [vmem:[%s1605_s23 + $0x3e8] sm:$0xff] %vm1117_vm0, %v1114_v0 }
 0x10c PF: > { %s12_s11 = sadd.s32 1, %s1484_s11   ;;  %s1999_s9 = smov %s1480_s10 }
 0x10d   : > { %p9_p5 = scmp.ge.s32.totalorder %s12_s11, 4   ;;  %s2000_s10 = smov %s2002_s12 }
 0x10f   :  { %11 = sbr.rel (!%p9_p5) target bundleno = 2 (0x2), region = 61 }

</bundles_post_ra>
